<compile_context>
chip_gen: v7x
topology: tpu7x:2x2x1
jax: 0.10.0
libtpu: 0.0.40
codegen_flags: <defaults>
</compile_context>

<pallas_src>
import functools

import jax
import jax.numpy as jnp
import numpy as np
from jax import lax
from jax.experimental import pallas as pl
from jax.experimental.pallas import tpu as pltpu

IMAGE_CHANNELS = 4
K1, S1, C1OUT = 8, 4, 16        # conv1: 4 -> 16, kernel 8, stride 4
K2, S2, C2OUT = 4, 2, 32        # conv2: 16 -> 32, kernel 4, stride 2
FC1_OUT = 256
CKK1 = IMAGE_CHANNELS * K1 * K1  # 256


def _conv_out(n, k, s):
    return (n - k) // s + 1


def _pick_tb(batch):
    """Largest batch block in {32,16,8} dividing B with >=2 grid steps; else whole batch."""
    for tb in (32, 16, 8):
        if batch % tb == 0 and batch // tb >= 2:
            return tb
    return batch


# ----------------------------------------------------------------------------
# Fused Pallas kernel: one grid step == TB batch elements, everything in VMEM.
# ----------------------------------------------------------------------------
def _fused_forward_kernel(xcol_ref, w1_ref, b1_ref, w2_ref, b2_ref,
                          wf_ref, bf_ref, wh_ref, bh_ref, out_ref,
                          h0_scr, h1_scr, *, tb, H1, W1, H2, W2):
    bf16 = jnp.bfloat16

    # ---- conv1 --------------------------------------------------------------
    # One (TB*H1, CKK1) @ (CKK1, 16) matmul per output column j1.  Writing the
    # 16 output channels into lane block [16*j1, 16*(j1+1)) makes h0 lane-dense
    # (shape (TB*H1, W1*16)), so conv2 below reads full-width rows.
    for j1 in range(W1):
        y = jnp.dot(xcol_ref[j1], w1_ref[...], preferred_element_type=jnp.float32)
        h0_scr[:, C1OUT * j1:C1OUT * (j1 + 1)] = jnp.maximum(y + b1_ref[...], 0.0)

    # ---- conv2 --------------------------------------------------------------
    # Per sample t and kernel row p: one strided-sublane slice of h0 (rows
    # 2*i2 + p, i2 in [0, H2)) and one matmul against the widened tap weight
    # (W1*16, W2*32); accumulate over the K2 kernel rows.  Zero lane concats.
    for t in range(tb):
        acc = jnp.zeros((H2, W2 * C2OUT), jnp.float32)
        for p in range(K2):
            lhs = h0_scr[pl.ds(t * H1 + p, H2, stride=S2), :].astype(bf16)
            acc = acc + jnp.dot(lhs, w2_ref[p], preferred_element_type=jnp.float32)
        h1_scr[t * H2:(t + 1) * H2, :] = jnp.maximum(acc + b2_ref[...], 0.0)

    # ---- fc1 ----------------------------------------------------------------
    # No flatten: accumulate H2 matmuls (TB, W2*32) @ (W2*32, 256).  The lhs
    # for conv2 output row i2 is one strided-sublane slice of h1 (rows t*H2+i2).
    acc = jnp.zeros((tb, FC1_OUT), jnp.float32)
    for i2 in range(H2):
        lhs = h1_scr[pl.ds(i2, tb, stride=H2), :].astype(bf16)
        acc = acc + jnp.dot(lhs, wf_ref[i2], preferred_element_type=jnp.float32)
    h3 = jnp.maximum(acc + bf_ref[...], 0.0)                     # (TB, 256) f32

    # ---- fused actor/critic heads: single (256, 2) matmul --------------------
    y = jnp.dot(h3.astype(bf16), wh_ref[...],
                preferred_element_type=jnp.float32) + bh_ref[...]
    actor = 0.5 * (jnp.tanh(0.5 * y[:, 0:1]) + 1.0)              # stable sigmoid (EUP)
    out_ref[...] = jnp.concatenate([actor, y[:, 1:2]], axis=-1)  # (TB, 2)


# ----------------------------------------------------------------------------
# Wrapper
# ----------------------------------------------------------------------------
def _conv1_patches(x, H1, W1):
    """Pure-slicing im2col for conv1: (B,4,H,W) f32 -> (W1, B*H1, 256) bf16.

    Rows are (sample, i1), lanes are (c, kh, kw) -- PyTorch's conv1 weight
    flattening order.  Pure data movement; no MXU work in the wrapper.
    """
    B = x.shape[0]
    taps = []
    for kh in range(K1):
        for kw in range(K1):
            taps.append(x[:, :, kh:kh + S1 * (H1 - 1) + 1:S1,
                            kw:kw + S1 * (W1 - 1) + 1:S1])       # (B, C, H1, W1)
    xp = jnp.stack(taps, axis=2)                                  # (B, C, 64, H1, W1)
    xcol = xp.transpose(4, 0, 3, 1, 2).reshape(W1, B * H1, CKK1)
    return xcol.astype(jnp.bfloat16)


def actor_critic_forward(x, params):
    """x: [B, 4, H, W] float32 (NCHW, like PyTorch). Returns (sigmoid(actor), critic)."""
    B, C, H, W = x.shape
    H1, W1 = _conv_out(H, K1, S1), _conv_out(W, K1, S1)
    H2, W2 = _conv_out(H1, K2, S2), _conv_out(W1, K2, S2)
    TB = _pick_tb(B)

    x_col = _conv1_patches(x, H1, W1)                             # (W1, B*H1, 256) bf16

    kernel = functools.partial(_fused_forward_kernel,
                               tb=TB, H1=H1, W1=W1, H2=H2, W2=W2)
    full = lambda shape: pl.BlockSpec(shape, lambda g, _n=len(shape): (0,) * _n)

    out = pl.pallas_call(
        kernel,
        out_shape=jax.ShapeDtypeStruct((B, 2), jnp.float32),
        grid_spec=pltpu.PrefetchScalarGridSpec(
            num_scalar_prefetch=0,
            grid=(B // TB,),
            in_specs=[
                pl.BlockSpec((W1, TB * H1, CKK1), lambda g: (0, g, 0)),
                full(params["w1"].shape), full(params["b1"].shape),
                full(params["w2"].shape), full(params["b2"].shape),
                full(params["wf"].shape), full(params["bf"].shape),
                full(params["wh"].shape), full(params["bh"].shape),
            ],
            out_specs=pl.BlockSpec((TB, 2), lambda g: (g, 0)),
            scratch_shapes=[
                pltpu.VMEM((TB * H1, W1 * C1OUT), jnp.float32),   # conv1 out (lane-dense)
                pltpu.VMEM((TB * H2, W2 * C2OUT), jnp.float32),   # conv2 out
            ],
        ),
        compiler_params=pltpu.CompilerParams(
            dimension_semantics=("parallel",),        # megacore / v7x 2-TC sharding
            vmem_limit_bytes=48 * 1024 * 1024),
    )(x_col, params["w1"], params["b1"], params["w2"], params["b2"],
      params["wf"], params["bf"], params["wh"], params["bh"])

    return out[:, 0:1], out[:, 1:2]


# ----------------------------------------------------------------------------
# Parameters: PyTorch layout -> kernel layout (one-time, trace-level permutes)
# ----------------------------------------------------------------------------
def init_torch_params(key, flat_dim, scale=0.1):
    ks = jax.random.split(key, 10)
    rnd = lambda k, shape: (jax.random.normal(k, shape) * scale).astype(jnp.float32)
    return dict(
        conv1_w=rnd(ks[0], (C1OUT, IMAGE_CHANNELS, K1, K1)),   # [Cout, Cin, KH, KW]
        conv1_b=rnd(ks[1], (C1OUT,)),
        conv2_w=rnd(ks[2], (C2OUT, C1OUT, K2, K2)),
        conv2_b=rnd(ks[3], (C2OUT,)),
        fc1_w=rnd(ks[4], (FC1_OUT, flat_dim)),                 # LazyLinear [out, in]
        fc1_b=rnd(ks[5], (FC1_OUT,)),
        actor_w=rnd(ks[6], (1, FC1_OUT)),
        actor_b=rnd(ks[7], (1,)),
        critic_w=rnd(ks[8], (1, FC1_OUT)),
        critic_b=rnd(ks[9], (1,)),
    )


def kernel_params_from_torch(tp, W1, H2, W2):
    """Permute PyTorch-layout ActorCritic weights into the fused-kernel layout (bf16 matmul weights)."""
    dt = jnp.bfloat16
    # conv1: rows (Cin, KH, KW) -- matches x_col lane order.
    w1 = tp["conv1_w"].reshape(C1OUT, -1).T.astype(dt)                        # (256, 16)
    b1 = tp["conv1_b"].reshape(1, C1OUT).astype(jnp.float32)
    # conv2, widened per kernel row p: rows are h0 lanes (j1, ci), cols (j2, co);
    # nonzero only where j1 = S2*j2 + q -- absorbs the kernel-column / stride structure.
    w2t = tp["conv2_w"]                                                       # (32, 16, 4, 4)
    w2big = jnp.zeros((K2, W1 * C1OUT, W2 * C2OUT), jnp.float32)
    for p in range(K2):
        for j2 in range(W2):
            for q in range(K2):
                j1 = S2 * j2 + q
                w2big = w2big.at[p, j1 * C1OUT:(j1 + 1) * C1OUT,
                                 j2 * C2OUT:(j2 + 1) * C2OUT].set(w2t[:, :, p, q].T)
    w2big = w2big.astype(dt)
    b2 = jnp.tile(tp["conv2_b"], (W2,)).reshape(1, W2 * C2OUT).astype(jnp.float32)
    # fc1: torch flatten order is (c, i2, j2); kernel lhs rows per i2 have lanes (j2, c).
    wf = (tp["fc1_w"].reshape(FC1_OUT, C2OUT, H2, W2)
          .transpose(2, 3, 1, 0).reshape(H2, W2 * C2OUT, FC1_OUT).astype(dt))
    bf_ = tp["fc1_b"].reshape(1, FC1_OUT).astype(jnp.float32)
    wh = jnp.concatenate([tp["actor_w"].T, tp["critic_w"].T], axis=1).astype(dt)  # (256, 2)
    bh = jnp.concatenate([tp["actor_b"], tp["critic_b"]]).reshape(1, 2).astype(jnp.float32)
    return dict(w1=w1, b1=b1, w2=w2big, b2=b2, wf=wf, bf=bf_, wh=wh, bh=bh)


# ----------------------------------------------------------------------------
# Pure-JAX f32 mirror of the PyTorch module (correctness reference)
# ----------------------------------------------------------------------------
def reference_forward(x, tp):
    hp = lax.Precision.HIGHEST
    h0 = jax.nn.relu(lax.conv_general_dilated(
        x, tp["conv1_w"], (S1, S1), "VALID",
        dimension_numbers=("NCHW", "OIHW", "NCHW"), precision=hp)
        + tp["conv1_b"][None, :, None, None])
    h1 = jax.nn.relu(lax.conv_general_dilated(
        h0, tp["conv2_w"], (S2, S2), "VALID",
        dimension_numbers=("NCHW", "OIHW", "NCHW"), precision=hp)
        + tp["conv2_b"][None, :, None, None])
    h2 = h1.reshape(h1.shape[0], -1)
    h3 = jax.nn.relu(jnp.dot(h2, tp["fc1_w"].T, precision=hp) + tp["fc1_b"])
    a1 = jnp.dot(h3, tp["actor_w"].T, precision=hp) + tp["actor_b"]
    c1 = jnp.dot(h3, tp["critic_w"].T, precision=hp) + tp["critic_b"]
    return jax.nn.sigmoid(a1), c1


if __name__ == "__main__":
    key = jax.random.PRNGKey(0)
    kx, kp = jax.random.split(key)

    # 32x32 input: conv1 -> 7x7, conv2 -> 2x2, flatten = 32*2*2 = 128
    # (spatial=16 would give an empty conv2 output, so 32 is the smallest clean size)
    B, H, W = 2, 32, 32
    x = jax.random.normal(kx, (B, IMAGE_CHANNELS, H, W), dtype=jnp.float32)

    H1, W1 = _conv_out(H, K1, S1), _conv_out(W, K1, S1)
    H2, W2 = _conv_out(H1, K2, S2), _conv_out(W1, K2, S2)
    flat_dim = C2OUT * H2 * W2

    torch_params = init_torch_params(kp, flat_dim)
    params = kernel_params_from_torch(torch_params, W1, H2, W2)

    out1, c1 = jax.jit(actor_critic_forward)(x, params)
    out1 = jax.block_until_ready(out1)
    c1 = jax.block_until_ready(c1)

    assert out1.shape == (B, 1) and c1.shape == (B, 1)
    assert bool(jnp.all(jnp.isfinite(out1)))
    assert bool(jnp.all(jnp.isfinite(c1)))
    assert bool(jnp.all((out1 >= 0.0) & (out1 <= 1.0)))

    # Parity check vs. the PyTorch-equivalent f32 reference.  bf16 activations /
    # weights give ~1e-2 RMS drift; layout / permutation bugs miss by O(1), so
    # this tolerance still catches them.
    ref_out1, ref_c1 = reference_forward(x, torch_params)
    np.testing.assert_allclose(np.asarray(out1), np.asarray(ref_out1), rtol=5e-2, atol=8e-2)
    np.testing.assert_allclose(np.asarray(c1), np.asarray(ref_c1), rtol=5e-2, atol=8e-2)

    print("KERNEL_OK")
</pallas_src>

<mosaic_0001>
module attributes {stable_mosaic.version = 11 : i64} {
  func.func @_fused_forward_kernel(%arg0: i32, %arg1: memref<7x14x256xbf16, #tpu.memory_space<vmem>>, %arg2: memref<256x16xbf16, #tpu.memory_space<vmem>>, %arg3: memref<1x16xf32, #tpu.memory_space<vmem>>, %arg4: memref<4x112x64xbf16, #tpu.memory_space<vmem>>, %arg5: memref<1x64xf32, #tpu.memory_space<vmem>>, %arg6: memref<2x64x256xbf16, #tpu.memory_space<vmem>>, %arg7: memref<1x256xf32, #tpu.memory_space<vmem>>, %arg8: memref<256x2xbf16, #tpu.memory_space<vmem>>, %arg9: memref<1x2xf32, #tpu.memory_space<vmem>>, %arg10: memref<2x2xf32, #tpu.memory_space<vmem>>, %arg11: memref<14x112xf32, #tpu.memory_space<vmem>>, %arg12: memref<4x64xf32, #tpu.memory_space<vmem>>) attributes {dimension_semantics = [#tpu.dimension_semantics<parallel>], iteration_bounds = array<i64: 1>, scalar_prefetch = 0 : i64, scratch_operands = 2 : i64, tpu.core_type = #tpu.core_type<tc>, window_params = [{transform_indices = @transform_0, window_bounds = array<i64: 7, 14, 256>}, {pipeline_mode = #tpu.pipeline_mode<synchronous>, transform_indices = @transform_1, window_bounds = array<i64: 256, 16>}, {pipeline_mode = #tpu.pipeline_mode<synchronous>, transform_indices = @transform_2, window_bounds = array<i64: 1, 16>}, {pipeline_mode = #tpu.pipeline_mode<synchronous>, transform_indices = @transform_3, window_bounds = array<i64: 4, 112, 64>}, {pipeline_mode = #tpu.pipeline_mode<synchronous>, transform_indices = @transform_4, window_bounds = array<i64: 1, 64>}, {pipeline_mode = #tpu.pipeline_mode<synchronous>, transform_indices = @transform_5, window_bounds = array<i64: 2, 64, 256>}, {pipeline_mode = #tpu.pipeline_mode<synchronous>, transform_indices = @transform_6, window_bounds = array<i64: 1, 256>}, {pipeline_mode = #tpu.pipeline_mode<synchronous>, transform_indices = @transform_7, window_bounds = array<i64: 256, 2>}, {pipeline_mode = #tpu.pipeline_mode<synchronous>, transform_indices = @transform_8, window_bounds = array<i64: 1, 2>}, {transform_indices = @transform_9, window_bounds = array<i64: 2, 2>}]} {
    %c0 = arith.constant 0 : index
    %c0_0 = arith.constant 0 : index
    %c0_1 = arith.constant 0 : index
    %0 = vector.load %arg1[%c0, %c0_0, %c0_1] : memref<7x14x256xbf16, #tpu.memory_space<vmem>>, vector<1x14x256xbf16>
    %1 = vector.shape_cast %0 : vector<1x14x256xbf16> to vector<14x256xbf16>
    %c0_2 = arith.constant 0 : index
    %c0_3 = arith.constant 0 : index
    %2 = vector.load %arg2[%c0_2, %c0_3] : memref<256x16xbf16, #tpu.memory_space<vmem>>, vector<256x16xbf16>
    %cst = arith.constant dense<0.000000e+00> : vector<14x16xf32>
    %3 = tpu.matmul %1, %2, %cst {dimension_numbers = #tpu.dot_dimension_numbers<[1], [0], [0], [1], [0, 0, 1, 1], [], []>} : vector<14x256xbf16>, vector<256x16xbf16>, vector<14x16xf32> -> vector<14x16xf32>
    %c0_4 = arith.constant 0 : index
    %c0_5 = arith.constant 0 : index
    %4 = vector.load %arg3[%c0_4, %c0_5] : memref<1x16xf32, #tpu.memory_space<vmem>>, vector<1x16xf32>
    %5 = vector.broadcast %4 : vector<1x16xf32> to vector<14x16xf32>
    %6 = arith.addf %3, %5 : vector<14x16xf32>
    %cst_6 = arith.constant 0.000000e+00 : f32
    %7 = vector.broadcast %cst_6 : f32 to vector<14x16xf32>
    %8 = arith.maximumf %6, %7 : vector<14x16xf32>
    %c0_7 = arith.constant 0 : index
    %c0_8 = arith.constant 0 : index
    %9 = vector.load %arg11[%c0_7, %c0_8] : memref<14x112xf32, #tpu.memory_space<vmem>>, vector<14x16xf32>
    tpu.vector_store %arg11[%c0_7, %c0_8], %8 {strides = array<i32>} : memref<14x112xf32, #tpu.memory_space<vmem>>, vector<14x16xf32>,
    %c1 = arith.constant 1 : index
    %c0_9 = arith.constant 0 : index
    %c0_10 = arith.constant 0 : index
    %10 = vector.load %arg1[%c1, %c0_9, %c0_10] : memref<7x14x256xbf16, #tpu.memory_space<vmem>>, vector<1x14x256xbf16>
    %11 = vector.shape_cast %10 : vector<1x14x256xbf16> to vector<14x256xbf16>
    %c0_11 = arith.constant 0 : index
    %c0_12 = arith.constant 0 : index
    %12 = vector.load %arg2[%c0_11, %c0_12] : memref<256x16xbf16, #tpu.memory_space<vmem>>, vector<256x16xbf16>
    %cst_13 = arith.constant dense<0.000000e+00> : vector<14x16xf32>
    %13 = tpu.matmul %11, %12, %cst_13 {dimension_numbers = #tpu.dot_dimension_numbers<[1], [0], [0], [1], [0, 0, 1, 1], [], []>} : vector<14x256xbf16>, vector<256x16xbf16>, vector<14x16xf32> -> vector<14x16xf32>
    %c0_14 = arith.constant 0 : index
    %c0_15 = arith.constant 0 : index
    %14 = vector.load %arg3[%c0_14, %c0_15] : memref<1x16xf32, #tpu.memory_space<vmem>>, vector<1x16xf32>
    %15 = vector.broadcast %14 : vector<1x16xf32> to vector<14x16xf32>
    %16 = arith.addf %13, %15 : vector<14x16xf32>
    %cst_16 = arith.constant 0.000000e+00 : f32
    %17 = vector.broadcast %cst_16 : f32 to vector<14x16xf32>
    %18 = arith.maximumf %16, %17 : vector<14x16xf32>
    %c0_17 = arith.constant 0 : index
    %c16 = arith.constant 16 : index
    %19 = vector.load %arg11[%c0_17, %c16] : memref<14x112xf32, #tpu.memory_space<vmem>>, vector<14x16xf32>
    tpu.vector_store %arg11[%c0_17, %c16], %18 {strides = array<i32>} : memref<14x112xf32, #tpu.memory_space<vmem>>, vector<14x16xf32>,
    %c2 = arith.constant 2 : index
    %c0_18 = arith.constant 0 : index
    %c0_19 = arith.constant 0 : index
    %20 = vector.load %arg1[%c2, %c0_18, %c0_19] : memref<7x14x256xbf16, #tpu.memory_space<vmem>>, vector<1x14x256xbf16>
    %21 = vector.shape_cast %20 : vector<1x14x256xbf16> to vector<14x256xbf16>
    %c0_20 = arith.constant 0 : index
    %c0_21 = arith.constant 0 : index
    %22 = vector.load %arg2[%c0_20, %c0_21] : memref<256x16xbf16, #tpu.memory_space<vmem>>, vector<256x16xbf16>
    %cst_22 = arith.constant dense<0.000000e+00> : vector<14x16xf32>
    %23 = tpu.matmul %21, %22, %cst_22 {dimension_numbers = #tpu.dot_dimension_numbers<[1], [0], [0], [1], [0, 0, 1, 1], [], []>} : vector<14x256xbf16>, vector<256x16xbf16>, vector<14x16xf32> -> vector<14x16xf32>
    %c0_23 = arith.constant 0 : index
    %c0_24 = arith.constant 0 : index
    %24 = vector.load %arg3[%c0_23, %c0_24] : memref<1x16xf32, #tpu.memory_space<vmem>>, vector<1x16xf32>
    %25 = vector.broadcast %24 : vector<1x16xf32> to vector<14x16xf32>
    %26 = arith.addf %23, %25 : vector<14x16xf32>
    %cst_25 = arith.constant 0.000000e+00 : f32
    %27 = vector.broadcast %cst_25 : f32 to vector<14x16xf32>
    %28 = arith.maximumf %26, %27 : vector<14x16xf32>
    %c0_26 = arith.constant 0 : index
    %c32 = arith.constant 32 : index
    %29 = vector.load %arg11[%c0_26, %c32] : memref<14x112xf32, #tpu.memory_space<vmem>>, vector<14x16xf32>
    tpu.vector_store %arg11[%c0_26, %c32], %28 {strides = array<i32>} : memref<14x112xf32, #tpu.memory_space<vmem>>, vector<14x16xf32>,
    %c3 = arith.constant 3 : index
    %c0_27 = arith.constant 0 : index
    %c0_28 = arith.constant 0 : index
    %30 = vector.load %arg1[%c3, %c0_27, %c0_28] : memref<7x14x256xbf16, #tpu.memory_space<vmem>>, vector<1x14x256xbf16>
    %31 = vector.shape_cast %30 : vector<1x14x256xbf16> to vector<14x256xbf16>
    %c0_29 = arith.constant 0 : index
    %c0_30 = arith.constant 0 : index
    %32 = vector.load %arg2[%c0_29, %c0_30] : memref<256x16xbf16, #tpu.memory_space<vmem>>, vector<256x16xbf16>
    %cst_31 = arith.constant dense<0.000000e+00> : vector<14x16xf32>
    %33 = tpu.matmul %31, %32, %cst_31 {dimension_numbers = #tpu.dot_dimension_numbers<[1], [0], [0], [1], [0, 0, 1, 1], [], []>} : vector<14x256xbf16>, vector<256x16xbf16>, vector<14x16xf32> -> vector<14x16xf32>
    %c0_32 = arith.constant 0 : index
    %c0_33 = arith.constant 0 : index
    %34 = vector.load %arg3[%c0_32, %c0_33] : memref<1x16xf32, #tpu.memory_space<vmem>>, vector<1x16xf32>
    %35 = vector.broadcast %34 : vector<1x16xf32> to vector<14x16xf32>
    %36 = arith.addf %33, %35 : vector<14x16xf32>
    %cst_34 = arith.constant 0.000000e+00 : f32
    %37 = vector.broadcast %cst_34 : f32 to vector<14x16xf32>
    %38 = arith.maximumf %36, %37 : vector<14x16xf32>
    %c0_35 = arith.constant 0 : index
    %c48 = arith.constant 48 : index
    %39 = vector.load %arg11[%c0_35, %c48] : memref<14x112xf32, #tpu.memory_space<vmem>>, vector<14x16xf32>
    tpu.vector_store %arg11[%c0_35, %c48], %38 {strides = array<i32>} : memref<14x112xf32, #tpu.memory_space<vmem>>, vector<14x16xf32>,
    %c4 = arith.constant 4 : index
    %c0_36 = arith.constant 0 : index
    %c0_37 = arith.constant 0 : index
    %40 = vector.load %arg1[%c4, %c0_36, %c0_37] : memref<7x14x256xbf16, #tpu.memory_space<vmem>>, vector<1x14x256xbf16>
    %41 = vector.shape_cast %40 : vector<1x14x256xbf16> to vector<14x256xbf16>
    %c0_38 = arith.constant 0 : index
    %c0_39 = arith.constant 0 : index
    %42 = vector.load %arg2[%c0_38, %c0_39] : memref<256x16xbf16, #tpu.memory_space<vmem>>, vector<256x16xbf16>
    %cst_40 = arith.constant dense<0.000000e+00> : vector<14x16xf32>
    %43 = tpu.matmul %41, %42, %cst_40 {dimension_numbers = #tpu.dot_dimension_numbers<[1], [0], [0], [1], [0, 0, 1, 1], [], []>} : vector<14x256xbf16>, vector<256x16xbf16>, vector<14x16xf32> -> vector<14x16xf32>
    %c0_41 = arith.constant 0 : index
    %c0_42 = arith.constant 0 : index
    %44 = vector.load %arg3[%c0_41, %c0_42] : memref<1x16xf32, #tpu.memory_space<vmem>>, vector<1x16xf32>
    %45 = vector.broadcast %44 : vector<1x16xf32> to vector<14x16xf32>
    %46 = arith.addf %43, %45 : vector<14x16xf32>
    %cst_43 = arith.constant 0.000000e+00 : f32
    %47 = vector.broadcast %cst_43 : f32 to vector<14x16xf32>
    %48 = arith.maximumf %46, %47 : vector<14x16xf32>
    %c0_44 = arith.constant 0 : index
    %c64 = arith.constant 64 : index
    %49 = vector.load %arg11[%c0_44, %c64] : memref<14x112xf32, #tpu.memory_space<vmem>>, vector<14x16xf32>
    tpu.vector_store %arg11[%c0_44, %c64], %48 {strides = array<i32>} : memref<14x112xf32, #tpu.memory_space<vmem>>, vector<14x16xf32>,
    %c5 = arith.constant 5 : index
    %c0_45 = arith.constant 0 : index
    %c0_46 = arith.constant 0 : index
    %50 = vector.load %arg1[%c5, %c0_45, %c0_46] : memref<7x14x256xbf16, #tpu.memory_space<vmem>>, vector<1x14x256xbf16>
    %51 = vector.shape_cast %50 : vector<1x14x256xbf16> to vector<14x256xbf16>
    %c0_47 = arith.constant 0 : index
    %c0_48 = arith.constant 0 : index
    %52 = vector.load %arg2[%c0_47, %c0_48] : memref<256x16xbf16, #tpu.memory_space<vmem>>, vector<256x16xbf16>
    %cst_49 = arith.constant dense<0.000000e+00> : vector<14x16xf32>
    %53 = tpu.matmul %51, %52, %cst_49 {dimension_numbers = #tpu.dot_dimension_numbers<[1], [0], [0], [1], [0, 0, 1, 1], [], []>} : vector<14x256xbf16>, vector<256x16xbf16>, vector<14x16xf32> -> vector<14x16xf32>
    %c0_50 = arith.constant 0 : index
    %c0_51 = arith.constant 0 : index
    %54 = vector.load %arg3[%c0_50, %c0_51] : memref<1x16xf32, #tpu.memory_space<vmem>>, vector<1x16xf32>
    %55 = vector.broadcast %54 : vector<1x16xf32> to vector<14x16xf32>
    %56 = arith.addf %53, %55 : vector<14x16xf32>
    %cst_52 = arith.constant 0.000000e+00 : f32
    %57 = vector.broadcast %cst_52 : f32 to vector<14x16xf32>
    %58 = arith.maximumf %56, %57 : vector<14x16xf32>
    %c0_53 = arith.constant 0 : index
    %c80 = arith.constant 80 : index
    %59 = vector.load %arg11[%c0_53, %c80] : memref<14x112xf32, #tpu.memory_space<vmem>>, vector<14x16xf32>
    tpu.vector_store %arg11[%c0_53, %c80], %58 {strides = array<i32>} : memref<14x112xf32, #tpu.memory_space<vmem>>, vector<14x16xf32>,
    %c6 = arith.constant 6 : index
    %c0_54 = arith.constant 0 : index
    %c0_55 = arith.constant 0 : index
    %60 = vector.load %arg1[%c6, %c0_54, %c0_55] : memref<7x14x256xbf16, #tpu.memory_space<vmem>>, vector<1x14x256xbf16>
    %61 = vector.shape_cast %60 : vector<1x14x256xbf16> to vector<14x256xbf16>
    %c0_56 = arith.constant 0 : index
    %c0_57 = arith.constant 0 : index
    %62 = vector.load %arg2[%c0_56, %c0_57] : memref<256x16xbf16, #tpu.memory_space<vmem>>, vector<256x16xbf16>
    %cst_58 = arith.constant dense<0.000000e+00> : vector<14x16xf32>
    %63 = tpu.matmul %61, %62, %cst_58 {dimension_numbers = #tpu.dot_dimension_numbers<[1], [0], [0], [1], [0, 0, 1, 1], [], []>} : vector<14x256xbf16>, vector<256x16xbf16>, vector<14x16xf32> -> vector<14x16xf32>
    %c0_59 = arith.constant 0 : index
    %c0_60 = arith.constant 0 : index
    %64 = vector.load %arg3[%c0_59, %c0_60] : memref<1x16xf32, #tpu.memory_space<vmem>>, vector<1x16xf32>
    %65 = vector.broadcast %64 : vector<1x16xf32> to vector<14x16xf32>
    %66 = arith.addf %63, %65 : vector<14x16xf32>
    %cst_61 = arith.constant 0.000000e+00 : f32
    %67 = vector.broadcast %cst_61 : f32 to vector<14x16xf32>
    %68 = arith.maximumf %66, %67 : vector<14x16xf32>
    %c0_62 = arith.constant 0 : index
    %c96 = arith.constant 96 : index
    %69 = vector.load %arg11[%c0_62, %c96] : memref<14x112xf32, #tpu.memory_space<vmem>>, vector<14x16xf32>
    tpu.vector_store %arg11[%c0_62, %c96], %68 {strides = array<i32>} : memref<14x112xf32, #tpu.memory_space<vmem>>, vector<14x16xf32>,
    %cst_63 = arith.constant 0.000000e+00 : f32
    %70 = vector.broadcast %cst_63 : f32 to vector<2x64xf32>
    %c0_64 = arith.constant 0 : index
    %c0_65 = arith.constant 0 : index
    %71 = tpu.strided_load %arg11[%c0_64, %c0_65] {strides = array<i32: 2, 1>} : memref<14x112xf32, #tpu.memory_space<vmem>>, vector<2x112xf32>
    %72 = arith.truncf %71 : vector<2x112xf32> to vector<2x112xbf16>
    %c0_66 = arith.constant 0 : index
    %c0_67 = arith.constant 0 : index
    %c0_68 = arith.constant 0 : index
    %73 = vector.load %arg4[%c0_66, %c0_67, %c0_68] : memref<4x112x64xbf16, #tpu.memory_space<vmem>>, vector<1x112x64xbf16>
    %74 = vector.shape_cast %73 : vector<1x112x64xbf16> to vector<112x64xbf16>
    %cst_69 = arith.constant dense<0.000000e+00> : vector<2x64xf32>
    %75 = tpu.matmul %72, %74, %cst_69 {dimension_numbers = #tpu.dot_dimension_numbers<[1], [0], [0], [1], [0, 0, 1, 1], [], []>} : vector<2x112xbf16>, vector<112x64xbf16>, vector<2x64xf32> -> vector<2x64xf32>
    %76 = arith.addf %70, %75 : vector<2x64xf32>
    %c1_70 = arith.constant 1 : index
    %c0_71 = arith.constant 0 : index
    %77 = tpu.strided_load %arg11[%c1_70, %c0_71] {strides = array<i32: 2, 1>} : memref<14x112xf32, #tpu.memory_space<vmem>>, vector<2x112xf32>
    %78 = arith.truncf %77 : vector<2x112xf32> to vector<2x112xbf16>
    %c1_72 = arith.constant 1 : index
    %c0_73 = arith.constant 0 : index
    %c0_74 = arith.constant 0 : index
    %79 = vector.load %arg4[%c1_72, %c0_73, %c0_74] : memref<4x112x64xbf16, #tpu.memory_space<vmem>>, vector<1x112x64xbf16>
    %80 = vector.shape_cast %79 : vector<1x112x64xbf16> to vector<112x64xbf16>
    %cst_75 = arith.constant dense<0.000000e+00> : vector<2x64xf32>
    %81 = tpu.matmul %78, %80, %cst_75 {dimension_numbers = #tpu.dot_dimension_numbers<[1], [0], [0], [1], [0, 0, 1, 1], [], []>} : vector<2x112xbf16>, vector<112x64xbf16>, vector<2x64xf32> -> vector<2x64xf32>
    %82 = arith.addf %76, %81 : vector<2x64xf32>
    %c2_76 = arith.constant 2 : index
    %c0_77 = arith.constant 0 : index
    %83 = tpu.strided_load %arg11[%c2_76, %c0_77] {strides = array<i32: 2, 1>} : memref<14x112xf32, #tpu.memory_space<vmem>>, vector<2x112xf32>
    %84 = arith.truncf %83 : vector<2x112xf32> to vector<2x112xbf16>
    %c2_78 = arith.constant 2 : index
    %c0_79 = arith.constant 0 : index
    %c0_80 = arith.constant 0 : index
    %85 = vector.load %arg4[%c2_78, %c0_79, %c0_80] : memref<4x112x64xbf16, #tpu.memory_space<vmem>>, vector<1x112x64xbf16>
    %86 = vector.shape_cast %85 : vector<1x112x64xbf16> to vector<112x64xbf16>
    %cst_81 = arith.constant dense<0.000000e+00> : vector<2x64xf32>
    %87 = tpu.matmul %84, %86, %cst_81 {dimension_numbers = #tpu.dot_dimension_numbers<[1], [0], [0], [1], [0, 0, 1, 1], [], []>} : vector<2x112xbf16>, vector<112x64xbf16>, vector<2x64xf32> -> vector<2x64xf32>
    %88 = arith.addf %82, %87 : vector<2x64xf32>
    %c3_82 = arith.constant 3 : index
    %c0_83 = arith.constant 0 : index
    %89 = tpu.strided_load %arg11[%c3_82, %c0_83] {strides = array<i32: 2, 1>} : memref<14x112xf32, #tpu.memory_space<vmem>>, vector<2x112xf32>
    %90 = arith.truncf %89 : vector<2x112xf32> to vector<2x112xbf16>
    %c3_84 = arith.constant 3 : index
    %c0_85 = arith.constant 0 : index
    %c0_86 = arith.constant 0 : index
    %91 = vector.load %arg4[%c3_84, %c0_85, %c0_86] : memref<4x112x64xbf16, #tpu.memory_space<vmem>>, vector<1x112x64xbf16>
    %92 = vector.shape_cast %91 : vector<1x112x64xbf16> to vector<112x64xbf16>
    %cst_87 = arith.constant dense<0.000000e+00> : vector<2x64xf32>
    %93 = tpu.matmul %90, %92, %cst_87 {dimension_numbers = #tpu.dot_dimension_numbers<[1], [0], [0], [1], [0, 0, 1, 1], [], []>} : vector<2x112xbf16>, vector<112x64xbf16>, vector<2x64xf32> -> vector<2x64xf32>
    %94 = arith.addf %88, %93 : vector<2x64xf32>
    %c0_88 = arith.constant 0 : index
    %c0_89 = arith.constant 0 : index
    %95 = vector.load %arg5[%c0_88, %c0_89] : memref<1x64xf32, #tpu.memory_space<vmem>>, vector<1x64xf32>
    %96 = vector.broadcast %95 : vector<1x64xf32> to vector<2x64xf32>
    %97 = arith.addf %94, %96 : vector<2x64xf32>
    %cst_90 = arith.constant 0.000000e+00 : f32
    %98 = vector.broadcast %cst_90 : f32 to vector<2x64xf32>
    %99 = arith.maximumf %97, %98 : vector<2x64xf32>
    %c0_91 = arith.constant 0 : index
    %c0_92 = arith.constant 0 : index
    %100 = vector.load %arg12[%c0_91, %c0_92] : memref<4x64xf32, #tpu.memory_space<vmem>>, vector<2x64xf32>
    tpu.vector_store %arg12[%c0_91, %c0_92], %99 {strides = array<i32>} : memref<4x64xf32, #tpu.memory_space<vmem>>, vector<2x64xf32>,
    %cst_93 = arith.constant 0.000000e+00 : f32
    %101 = vector.broadcast %cst_93 : f32 to vector<2x64xf32>
    %c7 = arith.constant 7 : index
    %c0_94 = arith.constant 0 : index
    %102 = tpu.strided_load %arg11[%c7, %c0_94] {strides = array<i32: 2, 1>} : memref<14x112xf32, #tpu.memory_space<vmem>>, vector<2x112xf32>
    %103 = arith.truncf %102 : vector<2x112xf32> to vector<2x112xbf16>
    %c0_95 = arith.constant 0 : index
    %c0_96 = arith.constant 0 : index
    %c0_97 = arith.constant 0 : index
    %104 = vector.load %arg4[%c0_95, %c0_96, %c0_97] : memref<4x112x64xbf16, #tpu.memory_space<vmem>>, vector<1x112x64xbf16>
    %105 = vector.shape_cast %104 : vector<1x112x64xbf16> to vector<112x64xbf16>
    %cst_98 = arith.constant dense<0.000000e+00> : vector<2x64xf32>
    %106 = tpu.matmul %103, %105, %cst_98 {dimension_numbers = #tpu.dot_dimension_numbers<[1], [0], [0], [1], [0, 0, 1, 1], [], []>} : vector<2x112xbf16>, vector<112x64xbf16>, vector<2x64xf32> -> vector<2x64xf32>
    %107 = arith.addf %101, %106 : vector<2x64xf32>
    %c8 = arith.constant 8 : index
    %c0_99 = arith.constant 0 : index
    %108 = tpu.strided_load %arg11[%c8, %c0_99] {strides = array<i32: 2, 1>} : memref<14x112xf32, #tpu.memory_space<vmem>>, vector<2x112xf32>
    %109 = arith.truncf %108 : vector<2x112xf32> to vector<2x112xbf16>
    %c1_100 = arith.constant 1 : index
    %c0_101 = arith.constant 0 : index
    %c0_102 = arith.constant 0 : index
    %110 = vector.load %arg4[%c1_100, %c0_101, %c0_102] : memref<4x112x64xbf16, #tpu.memory_space<vmem>>, vector<1x112x64xbf16>
    %111 = vector.shape_cast %110 : vector<1x112x64xbf16> to vector<112x64xbf16>
    %cst_103 = arith.constant dense<0.000000e+00> : vector<2x64xf32>
    %112 = tpu.matmul %109, %111, %cst_103 {dimension_numbers = #tpu.dot_dimension_numbers<[1], [0], [0], [1], [0, 0, 1, 1], [], []>} : vector<2x112xbf16>, vector<112x64xbf16>, vector<2x64xf32> -> vector<2x64xf32>
    %113 = arith.addf %107, %112 : vector<2x64xf32>
    %c9 = arith.constant 9 : index
    %c0_104 = arith.constant 0 : index
    %114 = tpu.strided_load %arg11[%c9, %c0_104] {strides = array<i32: 2, 1>} : memref<14x112xf32, #tpu.memory_space<vmem>>, vector<2x112xf32>
    %115 = arith.truncf %114 : vector<2x112xf32> to vector<2x112xbf16>
    %c2_105 = arith.constant 2 : index
    %c0_106 = arith.constant 0 : index
    %c0_107 = arith.constant 0 : index
    %116 = vector.load %arg4[%c2_105, %c0_106, %c0_107] : memref<4x112x64xbf16, #tpu.memory_space<vmem>>, vector<1x112x64xbf16>
    %117 = vector.shape_cast %116 : vector<1x112x64xbf16> to vector<112x64xbf16>
    %cst_108 = arith.constant dense<0.000000e+00> : vector<2x64xf32>
    %118 = tpu.matmul %115, %117, %cst_108 {dimension_numbers = #tpu.dot_dimension_numbers<[1], [0], [0], [1], [0, 0, 1, 1], [], []>} : vector<2x112xbf16>, vector<112x64xbf16>, vector<2x64xf32> -> vector<2x64xf32>
    %119 = arith.addf %113, %118 : vector<2x64xf32>
    %c10 = arith.constant 10 : index
    %c0_109 = arith.constant 0 : index
    %120 = tpu.strided_load %arg11[%c10, %c0_109] {strides = array<i32: 2, 1>} : memref<14x112xf32, #tpu.memory_space<vmem>>, vector<2x112xf32>
    %121 = arith.truncf %120 : vector<2x112xf32> to vector<2x112xbf16>
    %c3_110 = arith.constant 3 : index
    %c0_111 = arith.constant 0 : index
    %c0_112 = arith.constant 0 : index
    %122 = vector.load %arg4[%c3_110, %c0_111, %c0_112] : memref<4x112x64xbf16, #tpu.memory_space<vmem>>, vector<1x112x64xbf16>
    %123 = vector.shape_cast %122 : vector<1x112x64xbf16> to vector<112x64xbf16>
    %cst_113 = arith.constant dense<0.000000e+00> : vector<2x64xf32>
    %124 = tpu.matmul %121, %123, %cst_113 {dimension_numbers = #tpu.dot_dimension_numbers<[1], [0], [0], [1], [0, 0, 1, 1], [], []>} : vector<2x112xbf16>, vector<112x64xbf16>, vector<2x64xf32> -> vector<2x64xf32>
    %125 = arith.addf %119, %124 : vector<2x64xf32>
    %c0_114 = arith.constant 0 : index
    %c0_115 = arith.constant 0 : index
    %126 = vector.load %arg5[%c0_114, %c0_115] : memref<1x64xf32, #tpu.memory_space<vmem>>, vector<1x64xf32>
    %127 = vector.broadcast %126 : vector<1x64xf32> to vector<2x64xf32>
    %128 = arith.addf %125, %127 : vector<2x64xf32>
    %cst_116 = arith.constant 0.000000e+00 : f32
    %129 = vector.broadcast %cst_116 : f32 to vector<2x64xf32>
    %130 = arith.maximumf %128, %129 : vector<2x64xf32>
    %c2_117 = arith.constant 2 : index
    %c0_118 = arith.constant 0 : index
    %131 = vector.load %arg12[%c2_117, %c0_118] : memref<4x64xf32, #tpu.memory_space<vmem>>, vector<2x64xf32>
    tpu.vector_store %arg12[%c2_117, %c0_118], %130 {strides = array<i32>} : memref<4x64xf32, #tpu.memory_space<vmem>>, vector<2x64xf32>,
    %cst_119 = arith.constant 0.000000e+00 : f32
    %132 = vector.broadcast %cst_119 : f32 to vector<2x256xf32>
    %c0_120 = arith.constant 0 : index
    %c0_121 = arith.constant 0 : index
    %133 = tpu.strided_load %arg12[%c0_120, %c0_121] {strides = array<i32: 2, 1>} : memref<4x64xf32, #tpu.memory_space<vmem>>, vector<2x64xf32>
    %134 = arith.truncf %133 : vector<2x64xf32> to vector<2x64xbf16>
    %c0_122 = arith.constant 0 : index
    %c0_123 = arith.constant 0 : index
    %c0_124 = arith.constant 0 : index
    %135 = vector.load %arg6[%c0_122, %c0_123, %c0_124] : memref<2x64x256xbf16, #tpu.memory_space<vmem>>, vector<1x64x256xbf16>
    %136 = vector.shape_cast %135 : vector<1x64x256xbf16> to vector<64x256xbf16>
    %cst_125 = arith.constant dense<0.000000e+00> : vector<2x256xf32>
    %137 = tpu.matmul %134, %136, %cst_125 {dimension_numbers = #tpu.dot_dimension_numbers<[1], [0], [0], [1], [0, 0, 1, 1], [], []>} : vector<2x64xbf16>, vector<64x256xbf16>, vector<2x256xf32> -> vector<2x256xf32>
    %138 = arith.addf %132, %137 : vector<2x256xf32>
    %c1_126 = arith.constant 1 : index
    %c0_127 = arith.constant 0 : index
    %139 = tpu.strided_load %arg12[%c1_126, %c0_127] {strides = array<i32: 2, 1>} : memref<4x64xf32, #tpu.memory_space<vmem>>, vector<2x64xf32>
    %140 = arith.truncf %139 : vector<2x64xf32> to vector<2x64xbf16>
    %c1_128 = arith.constant 1 : index
    %c0_129 = arith.constant 0 : index
    %c0_130 = arith.constant 0 : index
    %141 = vector.load %arg6[%c1_128, %c0_129, %c0_130] : memref<2x64x256xbf16, #tpu.memory_space<vmem>>, vector<1x64x256xbf16>
    %142 = vector.shape_cast %141 : vector<1x64x256xbf16> to vector<64x256xbf16>
    %cst_131 = arith.constant dense<0.000000e+00> : vector<2x256xf32>
    %143 = tpu.matmul %140, %142, %cst_131 {dimension_numbers = #tpu.dot_dimension_numbers<[1], [0], [0], [1], [0, 0, 1, 1], [], []>} : vector<2x64xbf16>, vector<64x256xbf16>, vector<2x256xf32> -> vector<2x256xf32>
    %144 = arith.addf %138, %143 : vector<2x256xf32>
    %c0_132 = arith.constant 0 : index
    %c0_133 = arith.constant 0 : index
    %145 = vector.load %arg7[%c0_132, %c0_133] : memref<1x256xf32, #tpu.memory_space<vmem>>, vector<1x256xf32>
    %146 = vector.broadcast %145 : vector<1x256xf32> to vector<2x256xf32>
    %147 = arith.addf %144, %146 : vector<2x256xf32>
    %cst_134 = arith.constant 0.000000e+00 : f32
    %148 = vector.broadcast %cst_134 : f32 to vector<2x256xf32>
    %149 = arith.maximumf %147, %148 : vector<2x256xf32>
    %150 = arith.truncf %149 : vector<2x256xf32> to vector<2x256xbf16>
    %c0_135 = arith.constant 0 : index
    %c0_136 = arith.constant 0 : index
    %151 = vector.load %arg8[%c0_135, %c0_136] : memref<256x2xbf16, #tpu.memory_space<vmem>>, vector<256x2xbf16>
    %cst_137 = arith.constant dense<0.000000e+00> : vector<2x2xf32>
    %152 = tpu.matmul %150, %151, %cst_137 {dimension_numbers = #tpu.dot_dimension_numbers<[1], [0], [0], [1], [0, 0, 1, 1], [], []>} : vector<2x256xbf16>, vector<256x2xbf16>, vector<2x2xf32> -> vector<2x2xf32>
    %c0_138 = arith.constant 0 : index
    %c0_139 = arith.constant 0 : index
    %153 = vector.load %arg9[%c0_138, %c0_139] : memref<1x2xf32, #tpu.memory_space<vmem>>, vector<1x2xf32>
    %154 = vector.broadcast %153 : vector<1x2xf32> to vector<2x2xf32>
    %155 = arith.addf %152, %154 : vector<2x2xf32>
    %156 = vector.extract_strided_slice %155 {offsets = [0, 0], sizes = [2, 1], strides = [1, 1]} : vector<2x2xf32> to vector<2x1xf32>
    %cst_140 = arith.constant 5.000000e-01 : f32
    %157 = vector.broadcast %cst_140 : f32 to vector<2x1xf32>
    %158 = arith.mulf %157, %156 : vector<2x1xf32>
    %159 = math.tanh %158 : vector<2x1xf32>
    %cst_141 = arith.constant 1.000000e+00 : f32
    %160 = vector.broadcast %cst_141 : f32 to vector<2x1xf32>
    %161 = arith.addf %159, %160 : vector<2x1xf32>
    %cst_142 = arith.constant 5.000000e-01 : f32
    %162 = vector.broadcast %cst_142 : f32 to vector<2x1xf32>
    %163 = arith.mulf %162, %161 : vector<2x1xf32>
    %164 = vector.extract_strided_slice %155 {offsets = [0, 1], sizes = [2, 1], strides = [1, 1]} : vector<2x2xf32> to vector<2x1xf32>
    %165 = tpu.concatenate %163, %164 in 1 : vector<2x1xf32>, vector<2x1xf32> -> vector<2x2xf32>
    %c0_143 = arith.constant 0 : index
    %c0_144 = arith.constant 0 : index
    %166 = vector.load %arg10[%c0_143, %c0_144] : memref<2x2xf32, #tpu.memory_space<vmem>>, vector<2x2xf32>
    tpu.vector_store %arg10[%c0_143, %c0_144], %165 {strides = array<i32>} : memref<2x2xf32, #tpu.memory_space<vmem>>, vector<2x2xf32>,
    return
  }
  func.func @transform_0(%arg0: i32) -> (i32, i32, i32) {
    %c0_i32 = arith.constant 0 : i32
    %c0_i32_0 = arith.constant 0 : i32
    %c0_i32_1 = arith.constant 0 : i32
    return %c0_i32, %arg0, %c0_i32_0 : i32, i32, i32
  }
  func.func @transform_1(%arg0: i32) -> (i32, i32) {
    %c0_i32 = arith.constant 0 : i32
    %c0_i32_0 = arith.constant 0 : i32
    %c0_i32_1 = arith.constant 0 : i32
    return %c0_i32, %c0_i32_0 : i32, i32
  }
  func.func @transform_2(%arg0: i32) -> (i32, i32) {
    %c0_i32 = arith.constant 0 : i32
    %c0_i32_0 = arith.constant 0 : i32
    %c0_i32_1 = arith.constant 0 : i32
    return %c0_i32, %c0_i32_0 : i32, i32
  }
  func.func @transform_3(%arg0: i32) -> (i32, i32, i32) {
    %c0_i32 = arith.constant 0 : i32
    %c0_i32_0 = arith.constant 0 : i32
    %c0_i32_1 = arith.constant 0 : i32
    %c0_i32_2 = arith.constant 0 : i32
    return %c0_i32, %c0_i32_0, %c0_i32_1 : i32, i32, i32
  }
  func.func @transform_4(%arg0: i32) -> (i32, i32) {
    %c0_i32 = arith.constant 0 : i32
    %c0_i32_0 = arith.constant 0 : i32
    %c0_i32_1 = arith.constant 0 : i32
    return %c0_i32, %c0_i32_0 : i32, i32
  }
  func.func @transform_5(%arg0: i32) -> (i32, i32, i32) {
    %c0_i32 = arith.constant 0 : i32
    %c0_i32_0 = arith.constant 0 : i32
    %c0_i32_1 = arith.constant 0 : i32
    %c0_i32_2 = arith.constant 0 : i32
    return %c0_i32, %c0_i32_0, %c0_i32_1 : i32, i32, i32
  }
  func.func @transform_6(%arg0: i32) -> (i32, i32) {
    %c0_i32 = arith.constant 0 : i32
    %c0_i32_0 = arith.constant 0 : i32
    %c0_i32_1 = arith.constant 0 : i32
    return %c0_i32, %c0_i32_0 : i32, i32
  }
  func.func @transform_7(%arg0: i32) -> (i32, i32) {
    %c0_i32 = arith.constant 0 : i32
    %c0_i32_0 = arith.constant 0 : i32
    %c0_i32_1 = arith.constant 0 : i32
    return %c0_i32, %c0_i32_0 : i32, i32
  }
  func.func @transform_8(%arg0: i32) -> (i32, i32) {
    %c0_i32 = arith.constant 0 : i32
    %c0_i32_0 = arith.constant 0 : i32
    %c0_i32_1 = arith.constant 0 : i32
    return %c0_i32, %c0_i32_0 : i32, i32
  }
  func.func @transform_9(%arg0: i32) -> (i32, i32) {
    %c0_i32 = arith.constant 0 : i32
    %c0_i32_0 = arith.constant 0 : i32
    return %arg0, %c0_i32 : i32, i32
  }
}

</mosaic_0001>

<bundles_post_ra>
// kernel: actor_critic_forward.1
= control target key start
LH: loop header
LB: loop body
LE: loop exit
PB: predicated region body
PF: predicated region fallthrough
CT: control target
= control target key end

     0   :  { %vm223_vm0 = vcmask 130048   ;;  %vm225_vm1 = vcmask 128000   ;;  %s3651_s19 = smov 64   ;;  %s3652_s20 = smov 80   ;;  %vm3653_vm2 = vmmov 0   ;;  %vm426_vm3 = vcmask 261248   ;;  %s4479_s1 = inlined_call_operand.vmem [shape: bf16[256,16], index: 1, kind: input, shape index: {}]   ;;  %s4480_s0 = inlined_call_operand.vmem [shape: bf16[7,14,256], index: 0, kind: input, shape index: {}]   ;;  %s4481_s2 = inlined_call_operand.vmem [shape: f32[1,16], index: 2, kind: input, shape index: {}]   ;;  %s4482_s3 = inlined_call_operand.vmem [shape: bf16[4,112,64], index: 3, kind: input, shape index: {}]   ;;  %s4483_s5 = inlined_call_operand.vmem [shape: bf16[2,64,256], index: 5, kind: input, shape index: {}]   ;;  %s4484_s7 = inlined_call_operand.vmem [shape: bf16[256,2], index: 7, kind: input, shape index: {}]   ;;  %s4485_s4 = inlined_call_operand.vmem [shape: f32[1,64], index: 4, kind: input, shape index: {}]   ;;  %s4486_s6 = inlined_call_operand.vmem [shape: f32[1,256], index: 6, kind: input, shape index: {}]   ;;  %s4487_s8 = inlined_call_operand.vmem [shape: f32[1,2], index: 8, kind: input, shape index: {}]   ;;  %s4488_s9 = inlined_call_operand.vmem [shape: f32[2,2], index: 9, kind: output, shape index: {}]  }
   0x1   :  { %v3416_v0 = vld [vmem:[%s4479_s1 + $0x40] sm:$0xff]   ;;  %v3420_v4 = vld [vmem:[%s4479_s1 + $0x48] sm:$0xff]   ;;  %v3424_v8 = vld [vmem:[%s4479_s1 + $0x50] sm:$0xff]   ;;  %s3654_s18 = smov 96   ;;  %vm629_vm4 = vcmask 392448   ;;  %vm832_vm5 = vcmask 523648  }
   0x2   :  { %v3417_v1 = vld [vmem:[%s4479_s1 + $0x40] sm:$0xff]   ;;  %3023 = vmatprep.subr.bf16.mxu0 %v3416_v0  ;;  %v3421_v5 = vld [vmem:[%s4479_s1 + $0x48] sm:$0xff]   ;;  %v3425_v9 = vld [vmem:[%s4479_s1 + $0x50] sm:$0xff]   ;;  %vm1035_vm6 = vcmask 654848   ;;  %vm1238_vm7 = vcmask 786048   ;;  %vm428_vm8 = vcmask 259200  }
   0x3   :  { %v3418_v2 = vld [vmem:[%s4479_s1] sm:$0xff]   ;;  %3045 = vmatprep.subr.bf16.mxu1 %v3417_v1  ;;  %v3422_v6 = vld [vmem:[%s4479_s1 + $0x8] sm:$0xff]   ;;  %v3426_v10 = vld [vmem:[%s4479_s1 + $0x10] sm:$0xff]   ;;  %vm1441_vm9 = vcmask 917248   ;;  %vm631_vm10 = vcmask 390400   ;;  %vm834_vm11 = vcmask 521600  }
   0x4   :  { %v3419_v3 = vld [vmem:[%s4479_s1] sm:$0xff]   ;;  %3024 = vmatpush3.bf16.msra.mxu0 %v3418_v2  ;;  %v3423_v7 = vld [vmem:[%s4479_s1 + $0x8] sm:$0xff]   ;;  %v3427_v11 = vld [vmem:[%s4479_s1 + $0x10] sm:$0xff]   ;;  %vm1037_vm12 = vcmask 652800   ;;  %vm1521_vm13 = vcmask 916480   ;;  %vm1240_vm14 = vcmask 784000  }
   0x5   :  { %3046 = vmatpush3.bf16.msra.mxu1 %v3419_v3  ;;  %3025 = vmatprep.subr.bf16.mxu0 %v3420_v4  ;;  %v3428_v12 = vld [vmem:[%s4479_s1 + $0x58] sm:$0xff]   ;;  %v3432_v16 = vld [vmem:[%s4479_s1 + $0x60] sm:$0xff]   ;;  %v3436_v20 = vld [vmem:[%s4479_s1 + $0x68] sm:$0xff]   ;;  %vm1443_vm15 = vcmask 915200  }
   0x6   :  { %3047 = vmatprep.subr.bf16.mxu1 %v3421_v5  ;;  %v3429_v13 = vld [vmem:[%s4479_s1 + $0x58] sm:$0xff]   ;;  %v3433_v17 = vld [vmem:[%s4479_s1 + $0x60] sm:$0xff]   ;;  %v3437_v21 = vld [vmem:[%s4479_s1 + $0x68] sm:$0xff]  }
   0x7   :  { %v3430_v14 = vld [vmem:[%s4479_s1 + $0x18] sm:$0xff]   ;;  %v3434_v18 = vld [vmem:[%s4479_s1 + $0x20] sm:$0xff]   ;;  %v3438_v22 = vld [vmem:[%s4479_s1 + $0x28] sm:$0xff]  }
   0x8   :  { %3026 = vmatpush3.bf16.msra.mxu0 %v3422_v6  ;;  %v3431_v15 = vld [vmem:[%s4479_s1 + $0x18] sm:$0xff]   ;;  %v3435_v19 = vld [vmem:[%s4479_s1 + $0x20] sm:$0xff]   ;;  %v3439_v23 = vld [vmem:[%s4479_s1 + $0x28] sm:$0xff]  }
   0x9   :  { %3048 = vmatpush3.bf16.msra.mxu1 %v3423_v7  ;;  %3027 = vmatprep.subr.bf16.mxu0 %v3424_v8  ;;  %v3440_v24 = vld [vmem:[%s4479_s1 + $0x70] sm:$0xff]   ;;  %v3444_v28 = vld [vmem:[%s4479_s1 + $0x78] sm:$0xff]   ;;  %v3448_v32 = vld [vmem:[%s4480_s0] ss:$8 sps:$4 sm:$0x7f]  }
   0xa   :  { %3049 = vmatprep.subr.bf16.mxu1 %v3425_v9  ;;  %v3441_v25 = vld [vmem:[%s4479_s1 + $0x70] sm:$0xff]   ;;  %v3445_v29 = vld [vmem:[%s4479_s1 + $0x78] sm:$0xff]   ;;  %v3450_v33 = vld [vmem:[%s4480_s0 + $0x4] ss:$8 sps:$4 sm:$0x7f]  }
   0xb   :  { %v3442_v26 = vld [vmem:[%s4479_s1 + $0x30] sm:$0xff]   ;;  %v3446_v30 = vld [vmem:[%s4479_s1 + $0x38] sm:$0xff]   ;;  %212 = vmatprep.mubr.bf16.mxu0 %v3450_v33  ;;  %v3454_v36 = vld [vmem:[%s4479_s1 + $0x40] sm:$0xff]  }
   0xc   :  { %3028 = vmatpush3.bf16.msra.mxu0 %v3426_v10  ;;  %v3443_v27 = vld [vmem:[%s4479_s1 + $0x30] sm:$0xff]   ;;  %v3447_v31 = vld [vmem:[%s4479_s1 + $0x38] sm:$0xff]   ;;  %v3455_v37 = vld [vmem:[%s4479_s1 + $0x40] sm:$0xff]  }
   0xd   :  { %3050 = vmatpush3.bf16.msra.mxu1 %v3427_v11  ;;  %3029 = vmatprep.subr.bf16.mxu0 %v3428_v12  ;;  %v3451_v34 = vld [vmem:[%s4480_s0 + $0x10] ss:$8 sps:$4 sm:$0x7f]   ;;  %v3453_v35 = vld [vmem:[%s4480_s0 + $0x14] ss:$8 sps:$4 sm:$0x7f]  }
   0xe   :  { %3051 = vmatprep.subr.bf16.mxu1 %v3429_v13  ;;  %407 = vmatprep.mubr.bf16.mxu1 %v3453_v35  ;;  %v3456_v38 = vld [vmem:[%s4479_s1] sm:$0xff]   ;;  %v3458_v40 = vld [vmem:[%s4479_s1 + $0x48] sm:$0xff]   ;;  %v3462_v44 = vld [vmem:[%s4479_s1 + $0x50] sm:$0xff]  }
   0xf   :  { %v3457_v39 = vld [vmem:[%s4479_s1] sm:$0xff]   ;;  %v3459_v41 = vld [vmem:[%s4479_s1 + $0x48] sm:$0xff]   ;;  %v3463_v45 = vld [vmem:[%s4479_s1 + $0x50] sm:$0xff]  }
  0x10   :  { %3030 = vmatpush3.bf16.msra.mxu0 %v3430_v14  ;;  %v3460_v42 = vld [vmem:[%s4479_s1 + $0x8] sm:$0xff]   ;;  %v3464_v46 = vld [vmem:[%s4479_s1 + $0x10] sm:$0xff]   ;;  %v3466_v48 = vld [vmem:[%s4479_s1 + $0x58] sm:$0xff]  }
  0x11   :  { %3052 = vmatpush3.bf16.msra.mxu1 %v3431_v15  ;;  %3031 = vmatprep.subr.bf16.mxu0 %v3432_v16  ;;  %v3461_v43 = vld [vmem:[%s4479_s1 + $0x8] sm:$0xff]   ;;  %v3465_v47 = vld [vmem:[%s4479_s1 + $0x10] sm:$0xff]   ;;  %v3467_v49 = vld [vmem:[%s4479_s1 + $0x58] sm:$0xff]  }
  0x12   :  { %3053 = vmatprep.subr.bf16.mxu1 %v3433_v17  ;;  %v3468_v50 = vld [vmem:[%s4479_s1 + $0x18] sm:$0xff]   ;;  %v3470_v52 = vld [vmem:[%s4479_s1 + $0x60] sm:$0xff]   ;;  %v3474_v56 = vld [vmem:[%s4479_s1 + $0x68] sm:$0xff]  }
  0x13   :  { %v3469_v51 = vld [vmem:[%s4479_s1 + $0x18] sm:$0xff]   ;;  %v3471_v53 = vld [vmem:[%s4479_s1 + $0x60] sm:$0xff]   ;;  %v3475_v57 = vld [vmem:[%s4479_s1 + $0x68] sm:$0xff]  }
  0x14   :  { %3032 = vmatpush3.bf16.msra.mxu0 %v3434_v18  ;;  %v3472_v54 = vld [vmem:[%s4479_s1 + $0x20] sm:$0xff]   ;;  %v3476_v58 = vld [vmem:[%s4479_s1 + $0x28] sm:$0xff]   ;;  %v3478_v60 = vld [vmem:[%s4479_s1 + $0x70] sm:$0xff]  }
  0x15   :  { %3054 = vmatpush3.bf16.msra.mxu1 %v3435_v19  ;;  %3033 = vmatprep.subr.bf16.mxu0 %v3436_v20  ;;  %v3473_v55 = vld [vmem:[%s4479_s1 + $0x20] sm:$0xff]   ;;  %v3477_v59 = vld [vmem:[%s4479_s1 + $0x28] sm:$0xff]   ;;  %v3479_v61 = vld [vmem:[%s4479_s1 + $0x70] sm:$0xff]  }
  0x16   :  { %3055 = vmatprep.subr.bf16.mxu1 %v3437_v21  ;;  %v3480_v62 = vld [vmem:[%s4479_s1 + $0x30] sm:$0xff]   ;;  %v3482_v0 = vld [vmem:[%s4479_s1 + $0x78] sm:$0xff]   ;;  %v3486_v4 = vld [vmem:[%s4480_s0 + $0x20] ss:$8 sps:$4 sm:$0x7f]  }
  0x17   :  { %v3481_v63 = vld [vmem:[%s4479_s1 + $0x30] sm:$0xff]   ;;  %v3483_v1 = vld [vmem:[%s4479_s1 + $0x78] sm:$0xff]   ;;  %v3488_v5 = vld [vmem:[%s4480_s0 + $0x24] ss:$8 sps:$4 sm:$0x7f]  }
  0x18   :  { %3034 = vmatpush3.bf16.msra.mxu0 %v3438_v22  ;;  %v3484_v2 = vld [vmem:[%s4479_s1 + $0x38] sm:$0xff]   ;;  %v3492_v8 = vld [vmem:[%s4479_s1 + $0x40] sm:$0xff]   ;;  %v3496_v12 = vld [vmem:[%s4479_s1 + $0x48] sm:$0xff]  }
  0x19   :  { %3056 = vmatpush3.bf16.msra.mxu1 %v3439_v23  ;;  %3035 = vmatprep.subr.bf16.mxu0 %v3440_v24  ;;  %v3485_v3 = vld [vmem:[%s4479_s1 + $0x38] sm:$0xff]   ;;  %v3493_v9 = vld [vmem:[%s4479_s1 + $0x40] sm:$0xff]   ;;  %v3497_v13 = vld [vmem:[%s4479_s1 + $0x48] sm:$0xff]  }
  0x1a   :  { %3057 = vmatprep.subr.bf16.mxu1 %v3441_v25  ;;  %v3489_v6 = vld [vmem:[%s4480_s0 + $0x30] ss:$8 sps:$4 sm:$0x7f]   ;;  %v3491_v7 = vld [vmem:[%s4480_s0 + $0x34] ss:$8 sps:$4 sm:$0x7f]  }
  0x1b   :  { %v3494_v10 = vld [vmem:[%s4479_s1] sm:$0xff]   ;;  %v3498_v14 = vld [vmem:[%s4479_s1 + $0x8] sm:$0xff]   ;;  %v3500_v16 = vld [vmem:[%s4479_s1 + $0x50] sm:$0xff]  }
  0x1c   :  { %3036 = vmatpush3.bf16.msra.mxu0 %v3442_v26  ;;  %v3495_v11 = vld [vmem:[%s4479_s1] sm:$0xff]   ;;  %v3499_v15 = vld [vmem:[%s4479_s1 + $0x8] sm:$0xff]   ;;  %v3501_v17 = vld [vmem:[%s4479_s1 + $0x50] sm:$0xff]  }
  0x1d   :  { %3058 = vmatpush3.bf16.msra.mxu1 %v3443_v27  ;;  %3037 = vmatprep.subr.bf16.mxu0 %v3444_v28  ;;  %v3502_v18 = vld [vmem:[%s4479_s1 + $0x10] sm:$0xff]   ;;  %v3504_v20 = vld [vmem:[%s4479_s1 + $0x58] sm:$0xff]   ;;  %v3508_v24 = vld [vmem:[%s4479_s1 + $0x60] sm:$0xff]  }
  0x1e   :  { %3059 = vmatprep.subr.bf16.mxu1 %v3445_v29  ;;  %v3503_v19 = vld [vmem:[%s4479_s1 + $0x10] sm:$0xff]   ;;  %v3505_v21 = vld [vmem:[%s4479_s1 + $0x58] sm:$0xff]   ;;  %v3509_v25 = vld [vmem:[%s4479_s1 + $0x60] sm:$0xff]  }
  0x1f   :  { %v3506_v22 = vld [vmem:[%s4479_s1 + $0x18] sm:$0xff]   ;;  %v3510_v26 = vld [vmem:[%s4479_s1 + $0x20] sm:$0xff]   ;;  %v3512_v28 = vld [vmem:[%s4479_s1 + $0x68] sm:$0xff]  }
  0x20   :  { %3038 = vmatpush3.bf16.msra.mxu0 %v3446_v30  ;;  %v3507_v23 = vld [vmem:[%s4479_s1 + $0x18] sm:$0xff]   ;;  %v3511_v27 = vld [vmem:[%s4479_s1 + $0x20] sm:$0xff]   ;;  %v3513_v29 = vld [vmem:[%s4479_s1 + $0x68] sm:$0xff]  }
  0x21   :  { %3060 = vmatpush3.bf16.msra.mxu1 %v3447_v31  ;;  %3067 = vmatprep.subr.bf16.mxu0 %v3454_v36  ;;  %v3514_v30 = vld [vmem:[%s4479_s1 + $0x28] sm:$0xff]   ;;  %v3517_v33 = vld [vmem:[%s4479_s1 + $0x70] sm:$0xff]   ;;  %v3520_v36 = vld [vmem:[%s4479_s1 + $0x78] sm:$0xff]  }
  0x22   :  { %3089 = vmatprep.subr.bf16.mxu1 %v3455_v37  ;;  %v3515_v31 = vld [vmem:[%s4479_s1 + $0x28] sm:$0xff]   ;;  %v3519_v35 = vld [vmem:[%s4479_s1 + $0x30] sm:$0xff]   ;;  %v3521_v37 = vld [vmem:[%s4479_s1 + $0x78] sm:$0xff]  }
  0x23   :  { %213 = vmatmul.mubr.bf16.vlgmr.msra.gmra.mrb[0].mxu0 %v3448_v32  ;;  %v3516_v32 = vld [vmem:[%s4479_s1 + $0x70] sm:$0xff]  }
  0x24   :  { %408 = vmatmul.mubr.bf16.vlgmr.msra.gmra.mrb[0].mxu1 %v3451_v34  ;;  %3068 = vmatpush3.bf16.msra.mxu0 %v3456_v38  ;;  %v3518_v34 = vld [vmem:[%s4479_s1 + $0x30] sm:$0xff]   ;;  %v3522_v38 = vld [vmem:[%s4479_s1 + $0x38] sm:$0xff]  }
  0x25   :  { %3090 = vmatpush3.bf16.msra.mxu1 %v3457_v39  ;;  %3069 = vmatprep.subr.bf16.mxu0 %v3458_v40  ;;  %v3523_v39 = vld [vmem:[%s4479_s1 + $0x38] sm:$0xff]   ;;  %v3524_v40 = vld [vmem:[%s4480_s0 + $0x40] ss:$8 sps:$4 sm:$0x7f]  }
  0x26   :  { %3091 = vmatprep.subr.bf16.mxu1 %v3459_v41  ;;  %610 = vmatprep.mubr.bf16.mxu0 %v3488_v5  ;;  %v3526_v41 = vld [vmem:[%s4480_s0 + $0x44] ss:$8 sps:$4 sm:$0x7f]  }
  0x27   :  { %813 = vmatprep.mubr.bf16.mxu1 %v3491_v7 }
  0x28   :  { %3070 = vmatpush3.bf16.msra.mxu0 %v3460_v42  ;;  %v3527_v42 = vld [vmem:[%s4480_s0 + $0x50] ss:$8 sps:$4 sm:$0x7f]  }
  0x29   :  { %3092 = vmatpush3.bf16.msra.mxu1 %v3461_v43  ;;  %3071 = vmatprep.subr.bf16.mxu0 %v3462_v44  ;;  %v3529_v43 = vld [vmem:[%s4480_s0 + $0x54] ss:$8 sps:$4 sm:$0x7f]   ;;  %v3530_v44 = vld [vmem:[%s4479_s1 + $0x40] sm:$0xff]  }
  0x2a   :  { %3093 = vmatprep.subr.bf16.mxu1 %v3463_v45  ;;  %v3531_v45 = vld [vmem:[%s4479_s1] sm:$0xff]  }
  0x2c   :  { %3072 = vmatpush3.bf16.msra.mxu0 %v3464_v46  ;;  %v3532_v46 = vld [vmem:[%s4479_s1 + $0x48] sm:$0xff]  }
  0x2d   :  { %3094 = vmatpush3.bf16.msra.mxu1 %v3465_v47  ;;  %3073 = vmatprep.subr.bf16.mxu0 %v3466_v48  ;;  %v3533_v47 = vld [vmem:[%s4479_s1 + $0x8] sm:$0xff]   ;;  %v3534_v48 = vld [vmem:[%s4479_s1 + $0x50] sm:$0xff]  }
  0x2e   :  { %3095 = vmatprep.subr.bf16.mxu1 %v3467_v49  ;;  %v3535_v49 = vld [vmem:[%s4479_s1 + $0x10] sm:$0xff]  }
  0x30   :  { %3074 = vmatpush3.bf16.msra.mxu0 %v3468_v50  ;;  %v3536_v50 = vld [vmem:[%s4479_s1 + $0x58] sm:$0xff]  }
  0x31   :  { %3096 = vmatpush3.bf16.msra.mxu1 %v3469_v51  ;;  %3075 = vmatprep.subr.bf16.mxu0 %v3470_v52  ;;  %v3537_v51 = vld [vmem:[%s4479_s1 + $0x18] sm:$0xff]   ;;  %v3538_v52 = vld [vmem:[%s4479_s1 + $0x60] sm:$0xff]  }
  0x32   :  { %3097 = vmatprep.subr.bf16.mxu1 %v3471_v53  ;;  %v3539_v53 = vld [vmem:[%s4479_s1 + $0x20] sm:$0xff]  }
  0x34   :  { %3076 = vmatpush3.bf16.msra.mxu0 %v3472_v54  ;;  %v3540_v54 = vld [vmem:[%s4479_s1 + $0x68] sm:$0xff]  }
  0x35   :  { %3098 = vmatpush3.bf16.msra.mxu1 %v3473_v55  ;;  %3077 = vmatprep.subr.bf16.mxu0 %v3474_v56  ;;  %v3548_v55 = vld [vmem:[%s4480_s0 + $0x64] ss:$8 sps:$4 sm:$0x7f]  }
  0x36   :  { %3099 = vmatprep.subr.bf16.mxu1 %v3475_v57  ;;  %v3541_v56 = vld [vmem:[%s4479_s1 + $0x28] sm:$0xff]   ;;  %v3542_v57 = vld [vmem:[%s4479_s1 + $0x70] sm:$0xff]  }
  0x38   :  { %3078 = vmatpush3.bf16.msra.mxu0 %v3476_v58  ;;  %v3543_v58 = vld [vmem:[%s4479_s1 + $0x30] sm:$0xff]  }
  0x39   :  { %3100 = vmatpush3.bf16.msra.mxu1 %v3477_v59  ;;  %3079 = vmatprep.subr.bf16.mxu0 %v3478_v60  ;;  %v3544_v59 = vld [vmem:[%s4479_s1 + $0x78] sm:$0xff]  }
  0x3a   :  { %3101 = vmatprep.subr.bf16.mxu1 %v3479_v61  ;;  %v3545_v60 = vld [vmem:[%s4479_s1 + $0x38] sm:$0xff]   ;;  %v3546_v61 = vld [vmem:[%s4480_s0 + $0x60] ss:$8 sps:$4 sm:$0x7f]   ;;  %s3647_s0 = smov 16   ;;  %s3648_s1 = smov 32  }
  0x3c   :  { %3080 = vmatpush3.bf16.msra.mxu0 %v3480_v62 }
  0x3d   :  { %3102 = vmatpush3.bf16.msra.mxu1 %v3481_v63  ;;  %3081 = vmatprep.subr.bf16.mxu0 %v3482_v0  ;;  %v4087_v63 = vld [vmem:[%s4481_s2] ss:$0 sm:$0xff]  ;;  %s3649_s2 = smov 48  }
  0x3e   :  { %3103 = vmatprep.subr.bf16.mxu1 %v3483_v1 }
  0x40   :  { %3082 = vmatpush3.bf16.msra.mxu0 %v3484_v2 }
  0x41   :  { %3104 = vmatpush3.bf16.msra.mxu1 %v3485_v3  ;;  %3111 = vmatprep.subr.bf16.mxu0 %v3492_v8 }
  0x42   :  { %3133 = vmatprep.subr.bf16.mxu1 %v3493_v9 }
  0x43   :  { %611 = vmatmul.mubr.bf16.vlgmr.msra.gmra.mrb[4].mxu0 %v3486_v4 }
  0x44   :  { %814 = vmatmul.mubr.bf16.vlgmr.msra.gmra.mrb[4].mxu1 %v3489_v6  ;;  %3112 = vmatpush3.bf16.msra.mxu0 %v3494_v10 }
  0x45   :  { %3134 = vmatpush3.bf16.msra.mxu1 %v3495_v11  ;;  %3113 = vmatprep.subr.bf16.mxu0 %v3496_v12 }
  0x46   :  { %3135 = vmatprep.subr.bf16.mxu1 %v3497_v13  ;;  %1016 = vmatprep.mubr.bf16.mxu0 %v3526_v41 }
  0x47   :  { %1219 = vmatprep.mubr.bf16.mxu1 %v3529_v43 }
  0x48   :  { %3114 = vmatpush3.bf16.msra.mxu0 %v3498_v14 }
  0x49   :  { %3136 = vmatpush3.bf16.msra.mxu1 %v3499_v15  ;;  %3115 = vmatprep.subr.bf16.mxu0 %v3500_v16 }
  0x4a   :  { %3137 = vmatprep.subr.bf16.mxu1 %v3501_v17 }
  0x4c   :  { %3116 = vmatpush3.bf16.msra.mxu0 %v3502_v18 }
  0x4d   :  { %3138 = vmatpush3.bf16.msra.mxu1 %v3503_v19  ;;  %3117 = vmatprep.subr.bf16.mxu0 %v3504_v20 }
  0x4e   :  { %3139 = vmatprep.subr.bf16.mxu1 %v3505_v21 }
  0x50   :  { %3118 = vmatpush3.bf16.msra.mxu0 %v3506_v22 }
  0x51   :  { %3140 = vmatpush3.bf16.msra.mxu1 %v3507_v23  ;;  %3119 = vmatprep.subr.bf16.mxu0 %v3508_v24 }
  0x52   :  { %3141 = vmatprep.subr.bf16.mxu1 %v3509_v25 }
  0x54   :  { %3120 = vmatpush3.bf16.msra.mxu0 %v3510_v26 }
  0x55   :  { %3142 = vmatpush3.bf16.msra.mxu1 %v3511_v27  ;;  %3121 = vmatprep.subr.bf16.mxu0 %v3512_v28 }
  0x56   :  { %3143 = vmatprep.subr.bf16.mxu1 %v3513_v29 }
  0x58   :  { %3122 = vmatpush3.bf16.msra.mxu0 %v3514_v30 }
  0x59   :  { %3144 = vmatpush3.bf16.msra.mxu1 %v3515_v31  ;;  %3123 = vmatprep.subr.bf16.mxu0 %v3516_v32 }
  0x5a   :  { %3145 = vmatprep.subr.bf16.mxu1 %v3517_v33 }
  0x5c   :  { %3124 = vmatpush3.bf16.msra.mxu0 %v3518_v34 }
  0x5d   :  { %3146 = vmatpush3.bf16.msra.mxu1 %v3519_v35  ;;  %3125 = vmatprep.subr.bf16.mxu0 %v3520_v36 }
  0x5e   :  { %3147 = vmatprep.subr.bf16.mxu1 %v3521_v37 }
  0x60   :  { %3126 = vmatpush3.bf16.msra.mxu0 %v3522_v38 }
  0x61   :  { %3148 = vmatpush3.bf16.msra.mxu1 %v3523_v39  ;;  %3155 = vmatprep.subr.bf16.mxu0 %v3530_v44 }
  0x63   :  { %1017 = vmatmul.mubr.bf16.vlgmr.msra.gmra.mrb[8].mxu0 %v3524_v40 }
  0x64   :  { %1220 = vmatmul.mubr.bf16.vlgmr.msra.gmra.mrb[8].mxu1 %v3527_v42  ;;  %3156 = vmatpush3.bf16.msra.mxu0 %v3531_v45  ;;  %v3650_v45 = vmov 0.0  }
  0x65   :  { %3157 = vmatprep.subr.bf16.mxu0 %v3532_v46  ;;  %1422 = vmatprep.mubr.bf16.mxu0 %v3548_v55  ;;  %v3549_v46 = vld [vmem:[%s4482_s3 + $0x38] sm:$0xff]  }
  0x66   :  { %3263 = vmatprep.subr.bf16.mxu1 %v3650_v45  ;;  %3277 = vmatprep.mubr.msk.bf16.mxu1 %vm3653_vm2, %v3650_v45 }
  0x67   :  { %3264 = vmatpush3.bf16.msra.mxu1 %v3549_v46  ;;  %v3572_v46 = vld [vmem:[%s4482_s3 + $0x58] sm:$0xff]  }
  0x68   :  { %3158 = vmatpush3.bf16.msra.mxu0 %v3533_v47  ;;  %3265 = vmatprep.subr.bf16.mxu1 %v3650_v45 }
  0x69   :  { %3159 = vmatprep.subr.bf16.mxu0 %v3534_v48 }
  0x6c   :  { %3160 = vmatpush3.bf16.msra.mxu0 %v3535_v49  ;;  %v3550_v49 = vld [vmem:[%s4482_s3 + $0x70] sm:$0xff]  }
  0x6d   :  { %3161 = vmatprep.subr.bf16.mxu0 %v3536_v50 }
  0x70   :  { %3162 = vmatpush3.bf16.msra.mxu0 %v3537_v51  ;;  %v3551_v51 = vld [vmem:[%s4482_s3 + $0x40] sm:$0xff]  }
  0x71   :  { %3163 = vmatprep.subr.bf16.mxu0 %v3538_v52  ;;  %3266 = vmatpush3.bf16.msra.mxu1 %v3551_v51 }
  0x72   :  { %3267 = vmatprep.subr.bf16.mxu1 %v3650_v45 }
  0x74   :  { %3164 = vmatpush3.bf16.msra.mxu0 %v3539_v53 }
  0x75   :  { %3165 = vmatprep.subr.bf16.mxu0 %v3540_v54  ;;  %v3552_v54 = vld [vmem:[%s4482_s3 + $0x78] sm:$0xff]  }
  0x78   :  { %3166 = vmatpush3.bf16.msra.mxu0 %v3541_v56 }
  0x79   :  { %3167 = vmatprep.subr.bf16.mxu0 %v3542_v57  ;;  %v3553_v57 = vld [vmem:[%s4482_s3 + $0x48] sm:$0xff]  }
  0x7a   :  { %3268 = vmatpush3.bf16.msra.mxu1 %v3553_v57  ;;  %v3579_v57 = vld [vmem:[%s4482_s3 + $0xb0] sm:$0xff]  }
  0x7b   :  { %3269 = vmatprep.subr.bf16.mxu1 %v3650_v45 }
  0x7c   :  { %3168 = vmatpush3.bf16.msra.mxu0 %v3543_v58 }
  0x7d   :  { %3169 = vmatprep.subr.bf16.mxu0 %v3544_v59  ;;  %v3554_v59 = vld [vmem:[%s4482_s3 + $0x80] sm:$0xff]  }
  0x80   :  { %3170 = vmatpush3.bf16.msra.mxu0 %v3545_v60 }
  0x81   :  { %3299 = vmatprep.subr.bf16.mxu0 %v3650_v45 }
  0x83   :  { %1423 = vmatmul.mubr.bf16.vlgmr.msra.gmra.mrb[12].mxu0 %v3546_v61  ;;  %v3555_v61 = vld [vmem:[%s4482_s3 + $0x50] sm:$0xff]  }
  0x84   :  { %3300 = vmatpush3.bf16.msra.mxu0 %v3550_v49  ;;  %3270 = vmatpush3.bf16.msra.mxu1 %v3555_v61  ;;  %v3575_v49 = vld [vmem:[%s4482_s3 + $0x30] sm:$0xff]   ;;  %v3583_v61 = vld [vmem:[%s4482_s3 + $0xc0] sm:$0xff]  }
  0x85   :  { %3301 = vmatprep.subr.bf16.mxu0 %v3650_v45  ;;  %3271 = vmatprep.subr.bf16.mxu1 %v3650_v45 }
  0x86   :  { %3313 = vmatprep.mubr.msk.bf16.mxu0 %vm3653_vm2, %v3650_v45 }
  0x88   :  { %3302 = vmatpush3.bf16.msra.mxu0 %v3552_v54  ;;  %v3578_v54 = vld [vmem:[%s4482_s3 + $0x70] sm:$0xff]  }
  0x89   :  { %3303 = vmatprep.subr.bf16.mxu0 %v3650_v45 }
  0x8c   :  { %3304 = vmatpush3.bf16.msra.mxu0 %v3554_v59  ;;  %v3581_v59 = vld [vmem:[%s4482_s3 + $0xb8] sm:$0xff]  }
  0x8d   :  { %3305 = vmatprep.subr.bf16.mxu0 %v3650_v45 }
  0xf6   :  { %v3039_v62 = vpop.f32.mrb[0].mxu0 }
  0xf7   :  { %v3040_v0 = vpop.f32.mrb[1].mxu0  ;;  %v3061_v1 = vpop.f32.mrb[0].mxu1 }
  0xf8   :  { %v3041_v2 = vadd.f32 %v3040_v0, %v3039_v62  ;;  %v3042_v3 = vpop.f32.mrb[2].mxu0  ;;  %v3062_v4 = vpop.f32.mrb[1].mxu1  ;;  %v3556_v0 = vld [vmem:[%s4482_s3 + $0x88] sm:$0xff]  }
  0xf9   :  { %v3043_v5 = vpop.f32.mrb[3].mxu0  ;;  %v3063_v6 = vadd.f32 %v3062_v4, %v3061_v1  ;;  %v3064_v7 = vpop.f32.mrb[2].mxu1  ;;  %v3557_v1 = vld [vmem:[%s4482_s3 + $0x58] sm:$0xff]   ;;  %3306 = vmatpush3.bf16.msra.mxu0 %v3556_v0  ;;  %v3585_v0 = vld [vmem:[%s4482_s3 + $0xc8] sm:$0xff]  }
  0xfa   :  { %v215_v8 = vadd.f32 %v3041_v2, %v4087_v63  ;;  %v3044_v9 = vadd.f32 %v3043_v5, %v3042_v3  ;;  %v3065_v10 = vpop.f32.mrb[3].mxu1  ;;  %v3558_v2 = vld [vmem:[%s4482_s3 + $0x90] sm:$0xff]   ;;  %3307 = vmatprep.subr.bf16.mxu0 %v3650_v45  ;;  %3272 = vmatpush3.bf16.msra.mxu1 %v3557_v1  ;;  %v3559_v3 = vld [vmem:[%s4482_s3 + $0x60] sm:$0xff]   ;;  %v3560_v4 = vld [vmem:[%s4482_s3 + $0x98] sm:$0xff]  }
  0xfb   :  { %v3066_v11 = vadd.f32 %v3065_v10, %v3064_v7  ;;  %v410_v12 = vadd.f32 %v3063_v6, %v4087_v63  ;;  %3273 = vmatprep.subr.bf16.mxu1 %v3650_v45  ;;  %v3561_v5 = vld [vmem:[%s4482_s3 + $0x68] sm:$0xff]   ;;  %v3562_v6 = vld [vmem:[%s4482_s3 + $0xa0] sm:$0xff]   ;;  %v3586_v1 = vld [vmem:[%s4482_s3 + $0x90] sm:$0xff]  }
  0xfc   :  { %v221_v13 = vmax.f32 %v215_v8, 0.0  ;;  %v218_v14 = vadd.f32 %v3044_v9, %v4087_v63 }
  0xfd   :  { %v416_v15 = vmax.f32 %v410_v12, 0.0  ;;  %v413_v52 = vadd.f32 %v3066_v11, %v4087_v63  ;;  %3308 = vmatpush3.bf16.msra.mxu0 %v3558_v2  ;;  %v3587_v2 = vld [vmem:[%s4482_s3 + $0xd0] sm:$0xff]  }
  0xfe   :  { %v222_v16 = vmax.f32 %v218_v14, 0.0  ;;  %224 = vst.msk [vmem:[#allocation2] sm:$0xff] %vm223_vm0, %v221_v13  ;;  %3309 = vmatprep.subr.bf16.mxu0 %v3650_v45  ;;  %3274 = vmatpush3.bf16.msra.mxu1 %v3559_v3  ;;  %v3588_v3 = vld [vmem:[%s4482_s3 + $0x98] sm:$0xff]   ;;  %vm1867_vm0 = vcmask 517120  }
  0xff   :  { %420 = vrot.lane.b32.xlu0 %v416_v15, %s3647_s0  ;;  %v417_v58 = vmax.f32 %v413_v52, 0.0  ;;  %3275 = vmatprep.subr.bf16.mxu1 %v3650_v45 }
 0x100   :  { %226 = vst.msk [vmem:[#allocation2 + $0x8] sm:$0x3f] %vm225_vm1, %v222_v16  ;;  %vm2351_vm1 = vcmask 523264  }
 0x101   :  { %3310 = vmatpush3.bf16.msra.mxu0 %v3560_v4  ;;  %v3589_v4 = vld [vmem:[%s4482_s3 + $0xd8] sm:$0xff]  }
 0x102   :  { %3311 = vmatprep.subr.bf16.mxu0 %v3650_v45  ;;  %3276 = vmatpush3.bf16.msra.mxu1 %v3561_v5  ;;  %v3590_v5 = vld [vmem:[%s4482_s3 + $0xa0] sm:$0xff]  }
 0x103   :  { %3281 = vmatprep.subr.bf16.mxu1 %v3650_v45 }
 0x105   :  { %3312 = vmatpush3.bf16.msra.mxu0 %v3562_v6 }
 0x106   :  { %3335 = vmatprep.subr.bf16.mxu0 %v3650_v45 }
 0x116   :  { %v3083_v17 = vpop.f32.mrb[4].mxu0 }
 0x117   :  { %v3084_v18 = vpop.f32.mrb[5].mxu0  ;;  %v3105_v19 = vpop.f32.mrb[4].mxu1 }
 0x118   :  { %v3085_v20 = vadd.f32 %v3084_v18, %v3083_v17  ;;  %v3086_v21 = vpop.f32.mrb[6].mxu0  ;;  %v3106_v22 = vpop.f32.mrb[5].mxu1 }
 0x119   :  { %v3087_v23 = vpop.f32.mrb[7].mxu0  ;;  %v3107_v24 = vadd.f32 %v3106_v22, %v3105_v19  ;;  %v3108_v25 = vpop.f32.mrb[6].mxu1 }
 0x11a   :  { %v613_v26 = vadd.f32 %v3085_v20, %v4087_v63  ;;  %v4094_v27 = vadd.f32 %v3087_v23, %v3086_v21  ;;  %v3109_v28 = vpop.f32.mrb[7].mxu1 }
 0x11b   :  { %v3110_v29 = vadd.f32 %v3109_v28, %v3108_v25  ;;  %v816_v30 = vadd.f32 %v3107_v24, %v4087_v63 }
 0x11c   :  { %v619_v31 = vmax.f32 %v613_v26, 0.0  ;;  %v616_v12 = vadd.f32 %v4094_v27, %v4087_v63 }
 0x11d   :  { %v822_v32 = vmax.f32 %v816_v30, 0.0  ;;  %v819_v55 = vadd.f32 %v3110_v29, %v4087_v63  ;;  %v3563_v29 = vld [vmem:[%s4482_s3] sm:$0xff]   ;;  %v3564_v30 = vld [vmem:[%s4482_s3 + $0x38] sm:$0xff]  }
 0x11e   :  { %623 = vrot.lane.b32.xlu0 %v619_v31, %s3648_s1  ;;  %v620_v16 = vmax.f32 %v616_v12, 0.0  ;;  %v3593_v12 = vld [vmem:[%s4482_s3 + $0x10] sm:$0xff]  }
 0x11f   :  { %826 = vrot.lane.b32.xlu1 %v822_v32, %s3649_s2  ;;  %v823_v60 = vmax.f32 %v819_v55, 0.0 }
 0x136   :  { %v3127_v33 = vpop.f32.mrb[8].mxu0 }
 0x137   :  { %v3149_v34 = vpop.f32.mrb[8].mxu1  ;;  %v3128_v35 = vpop.f32.mrb[9].mxu0 }
 0x138   :  { %v3129_v36 = vadd.f32 %v3128_v35, %v3127_v33  ;;  %v3150_v37 = vpop.f32.mrb[9].mxu1  ;;  %v3130_v38 = vpop.f32.mrb[10].mxu0 }
 0x139   :  { %v3151_v39 = vadd.f32 %v3150_v37, %v3149_v34  ;;  %v3131_v40 = vpop.f32.mrb[11].mxu0  ;;  %v3152_v41 = vpop.f32.mrb[10].mxu1 }
 0x13a   :  { %v1019_v42 = vadd.f32 %v3129_v36, %v4087_v63  ;;  %v4100_v43 = vadd.f32 %v3131_v40, %v3130_v38  ;;  %v3153_v44 = vpop.f32.mrb[11].mxu1  ;;  %v3565_v38 = vld [vmem:[%s4482_s3 + $0x8] sm:$0xff]   ;;  %v3567_v40 = vld [vmem:[%s4482_s3 + $0x10] sm:$0xff]  }
 0x13b   :  { %v1222_v47 = vadd.f32 %v3151_v39, %v4087_v63  ;;  %v3154_v48 = vadd.f32 %v3153_v44, %v3152_v41  ;;  %v3566_v39 = vld [vmem:[%s4482_s3 + $0x40] sm:$0xff]   ;;  %v3568_v41 = vld [vmem:[%s4482_s3 + $0x48] sm:$0xff]  }
 0x13c   :  { %v1025_v50 = vmax.f32 %v1019_v42, 0.0  ;;  %v1022_v17 = vadd.f32 %v4100_v43, %v4087_v63  ;;  %v3569_v42 = vld [vmem:[%s4482_s3 + $0x18] sm:$0xff]   ;;  %v3570_v43 = vld [vmem:[%s4482_s3 + $0x50] sm:$0xff]   ;;  %v3571_v44 = vld [vmem:[%s4482_s3 + $0x20] sm:$0xff]  }
 0x13d   :  { %v1228_v53 = vmax.f32 %v1222_v47, 0.0  ;;  %v1225_v56 = vadd.f32 %v3154_v48, %v4087_v63  ;;  %v3573_v47 = vld [vmem:[%s4482_s3 + $0x28] sm:$0xff]   ;;  %v3574_v48 = vld [vmem:[%s4482_s3 + $0x60] sm:$0xff]  }
 0x13e   :  { %1029 = vrot.lane.b32.xlu1 %v1025_v50, %s3651_s19  ;;  %v1026_v18 = vmax.f32 %v1022_v17, 0.0  ;;  %v3576_v50 = vld [vmem:[%s4482_s3 + $0x68] sm:$0xff]  }
 0x13f   :  { %1232 = vrot.lane.b32.xlu0 %v1228_v53, %s3652_s20  ;;  %v1229_v62 = vmax.f32 %v1225_v56, 0.0  ;;  %v3577_v53 = vld [vmem:[%s4482_s3 + $0xa8] sm:$0xff]  }
 0x143   :  { %422 = vrot.lane.b32.xlu0 %v417_v58, %s3647_s0  ;;  %v3580_v58 = vld [vmem:[%s4482_s3 + $0x78] sm:$0xff]  }
 0x147   :  { %828 = vrot.lane.b32.xlu0 %v823_v60, %s3649_s2  ;;  %v3582_v60 = vld [vmem:[%s4482_s3 + $0x80] sm:$0xff]  }
 0x14b   :  { %1234 = vrot.lane.b32.xlu0 %v1229_v62, %s3652_s20  ;;  %v3584_v62 = vld [vmem:[%s4482_s3 + $0x88] sm:$0xff]  }
 0x156   :  { %v3171_v7 = vpop.f32.mrb[12].mxu0 }
 0x157   :  { %v3172_v8 = vpop.f32.mrb[13].mxu0 }
 0x158   :  { %v3173_v9 = vadd.f32 %v3172_v8, %v3171_v7  ;;  %v3174_v10 = vpop.f32.mrb[14].mxu0  ;;  %v3591_v8 = vld [vmem:[%s4482_s3] sm:$0xff]  }
 0x159   :  { %v3175_v11 = vpop.f32.mrb[15].mxu0 }
 0x15a   :  { %v1425_v13 = vadd.f32 %v3173_v9, %v4087_v63  ;;  %v3176_v14 = vadd.f32 %v3175_v11, %v3174_v10  ;;  %v3592_v11 = vld [vmem:[%s4482_s3 + $0x8] sm:$0xff]  }
 0x15c   :  { %v1431_v15 = vmax.f32 %v1425_v13, 0.0  ;;  %v1428_v19 = vadd.f32 %v3176_v14, %v4087_v63  ;;  %v3594_v13 = vld [vmem:[%s4482_s3 + $0x18] sm:$0xff]   ;;  %v3595_v14 = vld [vmem:[%s4482_s3 + $0x20] sm:$0xff]  }
 0x15e   :  { %1435 = vrot.lane.b32.xlu1 %v1431_v15, %s3654_s18  ;;  %v1432_v20 = vmax.f32 %v1428_v19, 0.0  ;;  %v3596_v15 = vld [vmem:[%s4482_s3 + $0x28] sm:$0xff]  }
 0x162   :  { %625 = vrot.lane.b32.xlu1 %v620_v16, %s3648_s1  ;;  %v3597_v16 = vld [vmem:[%s4482_s3 + $0x30] sm:$0xff]  }
 0x166   :  { %1031 = vrot.lane.b32.xlu1 %v1026_v18, %s3651_s19  ;;  %v3598_v18 = vld [vmem:[%s4482_s3 + $0xa8] sm:$0xff]  }
 0x16a   :  { %1437 = vrot.lane.b32.xlu1 %v1432_v20, %s3654_s18  ;;  %v3599_v20 = vld [vmem:[%s4482_s3 + $0xb0] sm:$0xff]  }
 0x171   :  { %v421_v21 = vpop.permute.xlu0 %420 }
 0x172   :  { %427 = vst.msk [vmem:[#allocation2] sm:$0xff] %vm426_vm3, %v421_v21  ;;  %v3600_v21 = vld [vmem:[%s4482_s3 + $0xb8] sm:$0xff]   ;;  %vm2679_vm3 = vcmask 9216  }
 0x190   :  { %v624_v22 = vpop.permute.xlu0 %623 }
 0x191   :  { %630 = vst.msk [vmem:[#allocation2] sm:$0xff] %vm629_vm4, %v624_v22  ;;  %v827_v23 = vpop.permute.xlu1 %826  ;;  %v3601_v22 = vld [vmem:[%s4482_s3 + $0xc0] sm:$0xff]  }
 0x192   :  { %833 = vst.msk [vmem:[#allocation2] sm:$0xff] %vm832_vm5, %v827_v23  ;;  %v3602_v23 = vld [vmem:[%s4482_s3 + $0xc8] sm:$0xff]  }
 0x1b0   :  { %v1030_v24 = vpop.permute.xlu1 %1029 }
 0x1b1   :  { %1036 = vst.msk [vmem:[#allocation2] sm:$0xff] %vm1035_vm6, %v1030_v24  ;;  %v1233_v25 = vpop.permute.xlu0 %1232  ;;  %v3603_v24 = vld [vmem:[%s4482_s3 + $0xd0] sm:$0xff]  }
 0x1b2   :  { %1239 = vst.msk [vmem:[#allocation2] sm:$0xff] %vm1238_vm7, %v1233_v25  ;;  %v3604_v25 = vld [vmem:[%s4482_s3 + $0xd8] sm:$0xff]  }
 0x1b5   :  { %v423_v63 = vpop.permute.xlu0 %422 }
 0x1b6   :  { %429 = vst.msk [vmem:[#allocation2 + $0x8] sm:$0x3f] %vm428_vm8, %v423_v63 }
 0x1b9   :  { %v829_v28 = vpop.permute.xlu0 %828 }
 0x1bd   :  { %v1235_v34 = vpop.permute.xlu0 %1234 }
 0x1d0   :  { %v1436_v26 = vpop.permute.xlu1 %1435 }
 0x1d1   :  { %1442 = vst.msk [vmem:[#allocation2] sm:$0xff] %vm1441_vm9, %v1436_v26 }
 0x1d4   :  { %v626_v27 = vpop.permute.xlu1 %625 }
 0x1d5   :  { %632 = vst.msk [vmem:[#allocation2 + $0x8] sm:$0x3f] %vm631_vm10, %v626_v27  ;;  %v3607_v27 = vld [vmem:[%s4483_s5 + $0x44] ss:$8 sps:$4 sm:$0xff]  }
 0x1d6   :  { %835 = vst.msk [vmem:[#allocation2 + $0x8] sm:$0x3f] %vm834_vm11, %v829_v28  ;;  %v3605_v28 = vld [vmem:[%s4483_s5 + $0x40] ss:$8 sps:$4 sm:$0xff]  }
 0x1d8   :  { %v1032_v31 = vpop.permute.xlu1 %1031  ;;  %v1462_v32 = vld [vmem:[#allocation2 + $0x1] ss:$2 sm:$0x3]  ;;  %v1651_v33 = vld [vmem:[#allocation2 + $0x2] ss:$2 sm:$0x3] }
 0x1d9   :  { %1038 = vst.msk [vmem:[#allocation2 + $0x8] sm:$0x3f] %vm1037_vm12, %v1032_v31  ;;  %v1463_v35 = vpack.c.bf16 %v1462_v32, %v1462_v32  ;;  %v1652_v36 = vpack.c.bf16 %v1651_v33, %v1651_v33  ;;  %v1445_v51 = vld [vmem:[#allocation2] ss:$2 sm:$0x3] }
 0x1da   :  { %1241 = vst.msk [vmem:[#allocation2 + $0x8] sm:$0x3f] %vm1240_vm14, %v1235_v34  ;;  %v1446_v55 = vpack.c.bf16 %v1445_v51, %v1445_v51  ;;  %v1755_v6 = vld [vmem:[#allocation2 + $0x3] ss:$2 sm:$0x3]  ;;  %v3655_v34 = vmov 0  }
 0x1db   :  { %3278 = vmatmul.mubr.msk.bf16.vlgmr.msra.gmra.mrb[12].mxu1 %vm1521_vm13, %v1463_v35  ;;  %3314 = vmatmul.mubr.msk.bf16.vlgmr.msra.gmra.mrb[16].mxu0 %vm1521_vm13, %v1652_v36  ;;  %v1756_v9 = vpack.c.bf16 %v1755_v6, %v1755_v6  ;;  %v3611_v31 = vld [vmem:[%s4483_s5 + $0x60] ss:$8 sps:$4 sm:$0xff]   ;;  %v3616_v32 = vld [vmem:[%s4483_s5 + $0x74] ss:$8 sps:$4 sm:$0xff]   ;;  %v3614_v33 = vld [vmem:[%s4483_s5 + $0x70] ss:$8 sps:$4 sm:$0xff]  }
 0x1dc   :  { %3282 = vmatpush3.bf16.msra.mxu1 %v3563_v29  ;;  %3336 = vmatpush3.bf16.msra.mxu0 %v3564_v30  ;;  %v1438_v37 = vpop.permute.xlu1 %1437  ;;  %v3610_v29 = vld [vmem:[%s4483_s5 + $0x54] ss:$8 sps:$4 sm:$0xff]   ;;  %v3613_v30 = vld [vmem:[%s4483_s5 + $0x64] ss:$8 sps:$4 sm:$0xff]  }
 0x1dd   :  { %1444 = vst.msk [vmem:[#allocation2 + $0x8] sm:$0x3f] %vm1443_vm15, %v1438_v37  ;;  %3283 = vmatprep.subr.bf16.mxu1 %v3650_v45  ;;  %3337 = vmatprep.subr.bf16.mxu0 %v3650_v45  ;;  %v3619_v35 = vld [vmem:[%s4483_s5 + $0x4] ss:$8 sps:$4 sm:$0xff]  }
 0x1de   :  { %3295 = vmatprep.mubr.msk.bf16.mxu1 %vm3653_vm2, %v3650_v45  ;;  %3349 = vmatprep.mubr.msk.bf16.mxu0 %vm3653_vm2, %v3650_v45 }
 0x1e0   :  { %3284 = vmatpush3.bf16.msra.mxu1 %v3565_v38  ;;  %3338 = vmatpush3.bf16.msra.mxu0 %v3566_v39 }
 0x1e1   :  { %3285 = vmatprep.subr.bf16.mxu1 %v3650_v45  ;;  %3339 = vmatprep.subr.bf16.mxu0 %v3650_v45 }
 0x1e4   :  { %3286 = vmatpush3.bf16.msra.mxu1 %v3567_v40  ;;  %3340 = vmatpush3.bf16.msra.mxu0 %v3568_v41  ;;  %v1887_v52 = vld [vmem:[#allocation2 + $0x8] ss:$2 sm:$0x3]  ;;  %v2074_v7 = vld [vmem:[#allocation2 + $0x9] ss:$2 sm:$0x3] }
 0x1e5   :  { %3287 = vmatprep.subr.bf16.mxu1 %v3650_v45  ;;  %3341 = vmatprep.subr.bf16.mxu0 %v3650_v45  ;;  %v1888_v56 = vpack.c.bf16 %v1887_v52, %v1887_v52  ;;  %v2075_v10 = vpack.c.bf16 %v2074_v7, %v2074_v7  ;;  %v1870_v17 = vld [vmem:[#allocation2 + $0x7] ss:$2 sm:$0x3]  ;;  %v2177_v63 = vld [vmem:[#allocation2 + $0xa] ss:$2 sm:$0x3] }
 0x1e6   :  { %v1871_v19 = vpack.c.bf16 %v1870_v17, %v1870_v17  ;;  %v2178_v26 = vpack.c.bf16 %v2177_v63, %v2177_v63  ;;  %v3625_v63 = vld [vmem:[%s4483_s5 + $0x24] ss:$8 sps:$4 sm:$0xff]  }
 0x1e8   :  { %3288 = vmatpush3.bf16.msra.mxu1 %v3569_v42  ;;  %3342 = vmatpush3.bf16.msra.mxu0 %v3570_v43 }
 0x1e9   :  { %3289 = vmatprep.subr.bf16.mxu1 %v3650_v45  ;;  %3343 = vmatprep.subr.bf16.mxu0 %v3650_v45 }
 0x1ec   :  { %3290 = vmatpush3.bf16.msra.mxu1 %v3571_v44  ;;  %3344 = vmatpush3.bf16.msra.mxu0 %v3572_v46  ;;  %v3629_v44 = vld [vmem:[%s4484_s7 + $0x40] sm:$0xff]  }
 0x1ed   :  { %3291 = vmatprep.subr.bf16.mxu1 %v3650_v45  ;;  %3345 = vmatprep.subr.bf16.mxu0 %v3650_v45  ;;  %v3630_v46 = vld [vmem:[%s4484_s7] sm:$0xff]  }
 0x1f0   :  { %3292 = vmatpush3.bf16.msra.mxu1 %v3573_v47  ;;  %3346 = vmatpush3.bf16.msra.mxu0 %v3574_v48  ;;  %v3631_v47 = vld [vmem:[%s4484_s7 + $0x48] sm:$0xff]  }
 0x1f1   :  { %3293 = vmatprep.subr.bf16.mxu1 %v3650_v45  ;;  %3347 = vmatprep.subr.bf16.mxu0 %v3650_v45  ;;  %v3632_v48 = vld [vmem:[%s4484_s7 + $0x8] sm:$0xff]  }
 0x1f4   :  { %3294 = vmatpush3.bf16.msra.mxu1 %v3575_v49  ;;  %3348 = vmatpush3.bf16.msra.mxu0 %v3576_v50 }
 0x1f5   :  { %3317 = vmatprep.subr.bf16.mxu1 %v3650_v45  ;;  %3371 = vmatprep.subr.bf16.mxu0 %v3650_v45 }
 0x1f7   :  { %3296 = vmatmul.mubr.msk.bf16.vlgmr.msra.gmra.mrb[16].mxu1 %vm1521_vm13, %v1446_v55  ;;  %3350 = vmatmul.mubr.msk.bf16.vlgmr.msra.gmra.mrb[20].mxu0 %vm1521_vm13, %v1888_v56 }
 0x1f8   :  { %3318 = vmatpush3.bf16.msra.mxu1 %v3577_v53  ;;  %3372 = vmatpush3.bf16.msra.mxu0 %v3578_v54 }
 0x1f9   :  { %3319 = vmatprep.subr.bf16.mxu1 %v3650_v45  ;;  %3373 = vmatprep.subr.bf16.mxu0 %v3650_v45 }
 0x1fa   :  { %3331 = vmatprep.mubr.msk.bf16.mxu1 %vm3653_vm2, %v3650_v45  ;;  %3385 = vmatprep.mubr.msk.bf16.mxu0 %vm3653_vm2, %v3650_v45 }
 0x1fc   :  { %3320 = vmatpush3.bf16.msra.mxu1 %v3579_v57  ;;  %3374 = vmatpush3.bf16.msra.mxu0 %v3580_v58 }
 0x1fd   :  { %3321 = vmatprep.subr.bf16.mxu1 %v3650_v45  ;;  %3375 = vmatprep.subr.bf16.mxu0 %v3650_v45 }
 0x200   :  { %3322 = vmatpush3.bf16.msra.mxu1 %v3581_v59  ;;  %3376 = vmatpush3.bf16.msra.mxu0 %v3582_v60  ;;  %v2904_v60 = vld [vmem:[%s4485_s4] ss:$0 sm:$0xff] }
 0x201   :  { %3323 = vmatprep.subr.bf16.mxu1 %v3650_v45  ;;  %3377 = vmatprep.subr.bf16.mxu0 %v3650_v45 }
 0x204   :  { %3324 = vmatpush3.bf16.msra.mxu1 %v3583_v61  ;;  %3378 = vmatpush3.bf16.msra.mxu0 %v3584_v62 }
 0x205   :  { %3325 = vmatprep.subr.bf16.mxu1 %v3650_v45  ;;  %3379 = vmatprep.subr.bf16.mxu0 %v3650_v45 }
 0x208   :  { %3326 = vmatpush3.bf16.msra.mxu1 %v3585_v0  ;;  %3380 = vmatpush3.bf16.msra.mxu0 %v3586_v1 }
 0x209   :  { %3327 = vmatprep.subr.bf16.mxu1 %v3650_v45  ;;  %3381 = vmatprep.subr.bf16.mxu0 %v3650_v45 }
 0x20c   :  { %3328 = vmatpush3.bf16.msra.mxu1 %v3587_v2  ;;  %3382 = vmatpush3.bf16.msra.mxu0 %v3588_v3 }
 0x20d   :  { %3329 = vmatprep.subr.bf16.mxu1 %v3650_v45  ;;  %3383 = vmatprep.subr.bf16.mxu0 %v3650_v45 }
 0x210   :  { %3330 = vmatpush3.bf16.msra.mxu1 %v3589_v4  ;;  %3384 = vmatpush3.bf16.msra.mxu0 %v3590_v5 }
 0x211   :  { %3353 = vmatprep.subr.bf16.mxu1 %v3650_v45  ;;  %2355 = vmatprep.subr.bf16.mxu0 %v3607_v27  ;;  %v3628_v27 = vld [vmem:[%s4483_s5 + $0x34] ss:$8 sps:$4 sm:$0xff]  }
 0x213   :  { %3332 = vmatmul.mubr.msk.bf16.vlgmr.msra.gmra.mrb[20].mxu1 %vm1521_vm13, %v1756_v9  ;;  %3386 = vmatmul.mubr.msk.bf16.vlgmr.msra.gmra.mrb[24].mxu0 %vm1521_vm13, %v2075_v10 }
 0x214   :  { %3354 = vmatpush3.bf16.msra.mxu1 %v3591_v8  ;;  %3367 = vmatprep.mubr.msk.bf16.mxu1 %vm3653_vm2, %v3650_v45 }
 0x215   :  { %3355 = vmatprep.subr.bf16.mxu1 %v3650_v45  ;;  %2356 = vmatpush1.bf16.msra.mxu0 %v3605_v28  ;;  %v3626_v28 = vld [vmem:[%s4483_s5 + $0x30] ss:$8 sps:$4 sm:$0xff]  }
 0x216   :  { %2357 = vmatprep.subr.bf16.mxu0 %v3610_v29  ;;  %2387 = vmatprep.mubr.bf16.mxu0 %v3655_v34 }
 0x218   :  { %3356 = vmatpush3.bf16.msra.mxu1 %v3592_v11 }
 0x219   :  { %3357 = vmatprep.subr.bf16.mxu1 %v3650_v45 }
 0x21c   :  { %3358 = vmatpush3.bf16.msra.mxu1 %v3593_v12 }
 0x21d   :  { %3359 = vmatprep.subr.bf16.mxu1 %v3650_v45 }
 0x220   :  { %3360 = vmatpush3.bf16.msra.mxu1 %v3594_v13 }
 0x221   :  { %3361 = vmatprep.subr.bf16.mxu1 %v3650_v45 }
 0x224   :  { %3362 = vmatpush3.bf16.msra.mxu1 %v3595_v14 }
 0x225   :  { %3363 = vmatprep.subr.bf16.mxu1 %v3650_v45 }
 0x228   :  { %3364 = vmatpush3.bf16.msra.mxu1 %v3596_v15 }
 0x229   :  { %3365 = vmatprep.subr.bf16.mxu1 %v3650_v45 }
 0x22c   :  { %3366 = vmatpush3.bf16.msra.mxu1 %v3597_v16 }
 0x22d   :  { %3389 = vmatprep.subr.bf16.mxu1 %v3650_v45 }
 0x22f   :  { %3368 = vmatmul.mubr.msk.bf16.vlgmr.msra.gmra.mrb[24].mxu1 %vm1521_vm13, %v1871_v19 }
 0x230   :  { %3390 = vmatpush3.bf16.msra.mxu1 %v3598_v18  ;;  %3403 = vmatprep.mubr.msk.bf16.mxu1 %vm3653_vm2, %v3650_v45  ;;  %vm2677_vm2 = vcmask 7168  }
 0x231   :  { %3391 = vmatprep.subr.bf16.mxu1 %v3650_v45 }
 0x234   :  { %3392 = vmatpush3.bf16.msra.mxu1 %v3599_v20 }
 0x235   :  { %3393 = vmatprep.subr.bf16.mxu1 %v3650_v45 }
 0x238   :  { %3394 = vmatpush3.bf16.msra.mxu1 %v3600_v21  ;;  %v3617_v21 = vld [vmem:[%s4483_s5] ss:$8 sps:$4 sm:$0xff]  }
 0x239   :  { %3395 = vmatprep.subr.bf16.mxu1 %v3650_v45 }
 0x23c   :  { %3396 = vmatpush3.bf16.msra.mxu1 %v3601_v22 }
 0x23d   :  { %3397 = vmatprep.subr.bf16.mxu1 %v3650_v45 }
 0x240   :  { %3398 = vmatpush3.bf16.msra.mxu1 %v3602_v23 }
 0x241   :  { %3399 = vmatprep.subr.bf16.mxu1 %v3650_v45 }
 0x244   :  { %3400 = vmatpush3.bf16.msra.mxu1 %v3603_v24  ;;  %v3622_v24 = vld [vmem:[%s4483_s5 + $0x14] ss:$8 sps:$4 sm:$0xff]  }
 0x245   :  { %3401 = vmatprep.subr.bf16.mxu1 %v3650_v45  ;;  %v3608_v45 = vld [vmem:[%s4483_s5 + $0x50] ss:$8 sps:$4 sm:$0xff]  }
 0x246   :  { %2358 = vmatpush1.bf16.msra.mxu0 %v3608_v45 }
 0x247   :  { %2359 = vmatprep.subr.bf16.mxu0 %v3613_v30  ;;  %v3633_v30 = vld [vmem:[%s4484_s7 + $0x50] sm:$0xff]  }
 0x248   :  { %3402 = vmatpush3.bf16.msra.mxu1 %v3604_v25  ;;  %v3620_v25 = vld [vmem:[%s4483_s5 + $0x10] ss:$8 sps:$4 sm:$0xff]  }
 0x249   :  { %3241 = vmatprep.subr.bf16.mxu1 %v3629_v44 }
 0x24a   :  { %2360 = vmatpush1.bf16.msra.mxu0 %v3611_v31  ;;  %v3634_v31 = vld [vmem:[%s4484_s7 + $0x10] sm:$0xff]  }
 0x24b   :  { %3404 = vmatmul.mubr.msk.bf16.vlgmr.msra.gmra.mrb[28].mxu1 %vm1521_vm13, %v2178_v26  ;;  %2361 = vmatprep.subr.bf16.mxu0 %v3616_v32  ;;  %v3623_v26 = vld [vmem:[%s4483_s5 + $0x20] ss:$8 sps:$4 sm:$0xff]   ;;  %v3635_v32 = vld [vmem:[%s4484_s7 + $0x58] sm:$0xff]  }
 0x24c   :  { %3242 = vmatpush3.bf16.msra.mxu1 %v3630_v46 }
 0x24d   :  { %3243 = vmatprep.subr.bf16.mxu1 %v3631_v47  ;;  %v2482_v47 = vlaneseq }
 0x24e   :  { %2362 = vmatpush1.bf16.msra.mxu0 %v3614_v33  ;;  %v3636_v33 = vld [vmem:[%s4484_s7 + $0x18] sm:$0xff]  }
 0x24f   :  { %2439 = vmatprep.subr.bf16.mxu0 %v3619_v35  ;;  %v3638_v35 = vld [vmem:[%s4484_s7 + $0x20] sm:$0xff]  }
 0x250   :  { %3244 = vmatpush3.bf16.msra.mxu1 %v3632_v48  ;;  %v2483_v48 = vshrl.u32 %v2482_v47, 7 }
 0x251   :  { %3245 = vmatprep.subr.bf16.mxu1 %v3633_v30 }
 0x254   :  { %3246 = vmatpush3.bf16.msra.mxu1 %v3634_v31 }
 0x255   :  { %3247 = vmatprep.subr.bf16.mxu1 %v3635_v32 }
 0x258   :  { %3248 = vmatpush3.bf16.msra.mxu1 %v3636_v33 }
 0x2ae   :  { %v1559_v36 = vpop.f32.mrb[12].mxu1  ;;  %v1747_v37 = vpop.f32.mrb[16].mxu0 }
 0x2af   :  { %v3279_v38 = vpop.f32.mrb[13].mxu1  ;;  %v3315_v39 = vpop.f32.mrb[17].mxu0 }
 0x2b0   :  { %v1562_v40 = vpop.f32.mrb[14].mxu1  ;;  %v1750_v41 = vpop.f32.mrb[18].mxu0  ;;  %v3641_v38 = vld [vmem:[%s4484_s7 + $0x70] sm:$0xff]  }
 0x2b1   :  { %v3280_v42 = vpop.f32.mrb[15].mxu1  ;;  %v3316_v43 = vpop.f32.mrb[19].mxu0  ;;  %v3642_v39 = vld [vmem:[%s4484_s7 + $0x30] sm:$0xff]   ;;  %v3643_v40 = vld [vmem:[%s4484_s7 + $0x78] sm:$0xff]  }
 0x2b2   :  { %v3644_v41 = vld [vmem:[%s4484_s7 + $0x38] sm:$0xff]  }
 0x2ca   :  { %v1644_v49 = vpop.f32.mrb[16].mxu1  ;;  %v1982_v50 = vpop.f32.mrb[20].mxu0 }
 0x2cb   :  { %v1645_v51 = vadd.f32 %v1644_v49, %v1559_v36  ;;  %v3297_v52 = vpop.f32.mrb[17].mxu1  ;;  %v3351_v53 = vpop.f32.mrb[21].mxu0  ;;  %v3639_v36 = vld [vmem:[%s4484_s7 + $0x68] sm:$0xff]   ;;  %v2484_v49 = vsub.s32 0, %v2483_v48 }
 0x2cc   :  { %v1647_v54 = vpop.f32.mrb[18].mxu1  ;;  %v1985_v55 = vpop.f32.mrb[22].mxu0 }
 0x2cd   :  { %v3298_v56 = vpop.f32.mrb[19].mxu1  ;;  %v3352_v57 = vpop.f32.mrb[23].mxu0  ;;  %v1753_v58 = vadd.f32 %v1747_v37, %v1645_v51  ;;  %v3640_v37 = vld [vmem:[%s4484_s7 + $0x28] sm:$0xff]   ;;  %v2488_v51 = vsub.s32 1, %v2483_v48 }
 0x2e6   :  { %v1851_v59 = vpop.f32.mrb[20].mxu1  ;;  %v2169_v61 = vpop.f32.mrb[24].mxu0 }
 0x2e7   :  { %v1857_v62 = vadd.f32 %v1851_v59, %v1753_v58  ;;  %v3333_v0 = vpop.f32.mrb[21].mxu1  ;;  %v3387_v1 = vpop.f32.mrb[25].mxu0 }
 0x2e8   :  { %v1854_v2 = vpop.f32.mrb[22].mxu1  ;;  %v2172_v3 = vpop.f32.mrb[26].mxu0 }
 0x2e9   :  { %v1865_v4 = vadd.f32 %v2904_v60, %v1857_v62  ;;  %v3334_v5 = vpop.f32.mrb[23].mxu1  ;;  %v3388_v6 = vpop.f32.mrb[27].mxu0 }
 0x2eb   :  { %v1866_v7 = vmax.f32 %v1865_v4, 0.0  ;;  %v3006_v4 = vld [vmem:[%s4487_s8] ss:$0 sm:$0xff] }
 0x2ed   :  { %1868 = vst.msk [vmem:[#allocation3] sm:$0x3] %vm1867_vm0, %v1866_v7 }
 0x302   :  { %v2067_v8 = vpop.f32.mrb[24].mxu1 }
 0x303   :  { %v2068_v9 = vadd.f32 %v2067_v8, %v1982_v50  ;;  %v3369_v10 = vpop.f32.mrb[25].mxu1  ;;  %v2480_v50 = vld [vmem:[%s4486_s6] sm:$0x3] }
 0x304   :  { %v2070_v11 = vpop.f32.mrb[26].mxu1  ;;  %v2485_v52 = vrot.slane %v2480_v50, %v2484_v49  ;;  %v2489_v54 = vrot.slane %v2480_v50, %v2488_v51 }
 0x305   :  { %v3370_v12 = vpop.f32.mrb[27].mxu1  ;;  %v2175_v13 = vadd.f32 %v2169_v61, %v2068_v9 }
 0x31e   :  { %v2272_v14 = vpop.f32.mrb[28].mxu1 }
 0x31f   :  { %v2278_v15 = vadd.f32 %v2272_v14, %v2175_v13  ;;  %v3405_v16 = vpop.f32.mrb[29].mxu1 }
 0x320   :  { %v2275_v17 = vpop.f32.mrb[30].mxu1 }
 0x321   :  { %v2286_v18 = vadd.f32 %v2904_v60, %v2278_v15  ;;  %v3406_v19 = vpop.f32.mrb[31].mxu1 }
 0x323   :  { %v2287_v20 = vmax.f32 %v2286_v18, 0.0 }
 0x325   :  { %2288 = vst.msk [vmem:[#allocation3 + $0x2] sm:$0x3] %vm1867_vm0, %v2287_v20 }
 0x32c   :  { %v2300_v22 = vld [vmem:[#allocation3 + $0x1] ss:$2 sm:$0x3]  ;;  %v2289_v29 = vld [vmem:[#allocation3] ss:$2 sm:$0x3] }
 0x32d   :  { %v2301_v23 = vpack.c.bf16 %v2300_v22, %v2300_v22  ;;  %v2290_v45 = vpack.c.bf16 %v2289_v29, %v2289_v29 }
 0x32f   :  { %2996 = vmatmul.mubr.msk.bf16.vlgmr.msra.gmra.mrb[28].mxu0 %vm2351_vm1, %v2301_v23 }
 0x330   :  { %2440 = vmatpush1.bf16.msra.mxu0 %v3617_v21  ;;  %2471 = vmatprep.mubr.bf16.mxu0 %v3655_v34  ;;  %v3637_v34 = vld [vmem:[%s4484_s7 + $0x60] sm:$0xff]  }
 0x331   :  { %2441 = vmatprep.subr.bf16.mxu0 %v3622_v24  ;;  %3249 = vmatprep.subr.bf16.mxu1 %v3637_v34 }
 0x332   :  { %3250 = vmatpush3.bf16.msra.mxu1 %v3638_v35 }
 0x333   :  { %3251 = vmatprep.subr.bf16.mxu1 %v3639_v36 }
 0x334   :  { %2442 = vmatpush1.bf16.msra.mxu0 %v3620_v25 }
 0x335   :  { %2443 = vmatprep.subr.bf16.mxu0 %v3625_v63 }
 0x336   :  { %3252 = vmatpush3.bf16.msra.mxu1 %v3640_v37 }
 0x337   :  { %3253 = vmatprep.subr.bf16.mxu1 %v3641_v38 }
 0x338   :  { %2444 = vmatpush1.bf16.msra.mxu0 %v3623_v26 }
 0x339   :  { %2445 = vmatprep.subr.bf16.mxu0 %v3628_v27 }
 0x33a   :  { %3254 = vmatpush3.bf16.msra.mxu1 %v3642_v39 }
 0x33b   :  { %3255 = vmatprep.subr.bf16.mxu1 %v3643_v40 }
 0x33c   :  { %2446 = vmatpush1.bf16.msra.mxu0 %v3626_v28 }
 0x33e   :  { %3256 = vmatpush3.bf16.msra.mxu1 %v3644_v41 }
 0x33f   :  { %3005 = vmatmul.mubr.msk.bf16.vlgmr.msra.gmra.mrb[32].mxu0 %vm2351_vm1, %v2290_v45 }
 0x402   :  { %v2389_v42 = vpop.f32.mrb[28].mxu0 }
 0x403   :  { %v2391_v43 = vpop.f32.mrb[29].mxu0 }
 0x404   :  { %v2393_v44 = vpop.f32.mrb[30].mxu0 }
 0x405   :  { %v2394_v46 = vpop.f32.mrb[31].mxu0 }
 0x412   :  { %v2473_v53 = vpop.f32.mrb[32].mxu0 }
 0x413   :  { %v2474_v55 = vadd.f32 %v2473_v53, %v2389_v42  ;;  %v2475_v56 = vpop.f32.mrb[33].mxu0 }
 0x414   :  { %v2476_v57 = vadd.f32 %v2475_v56, %v2391_v43  ;;  %v2477_v58 = vpop.f32.mrb[34].mxu0 }
 0x415   :  { %v2492_v59 = vadd.f32 %v2485_v52, %v2474_v55  ;;  %v2478_v60 = vpop.f32.mrb[35].mxu0 }
 0x416   :  { %v2493_v61 = vadd.f32 %v2489_v54, %v2476_v57 }
 0x417   :  { %v2494_v62 = vmax.f32 %v2492_v59, 0.0 }
 0x418   :  { %v2495_v0 = vmax.f32 %v2493_v61, 0.0 }
 0x419   :  { %v2496_v2 = vpack.c.bf16 %v2494_v62, %v2494_v62 }
 0x41a   :  { %v2497_v1 = vpack.c.bf16 %v2495_v0, %v2495_v0 }
 0x41c   :  { %2665 = vmatprep.mubr.bf16.mxu1 %v2497_v1 }
 0x41d   :  { %2666 = vmatmul.mubr.bf16.vlgmr.msra.gmra.mrb[32].mxu1 %v2496_v2 }
 0x4f0   :  { %v3257_v3 = vpop.f32.mrb[32].mxu1 }
 0x4f1   :  { %v3258_v5 = vpop.f32.mrb[33].mxu1 }
 0x4f2   :  { %v3259_v6 = vadd.f32 %v3258_v5, %v3257_v3  ;;  %v3260_v7 = vpop.f32.mrb[34].mxu1 }
 0x4f3   :  { %v3261_v8 = vpop.f32.mrb[35].mxu1 }
 0x4f4   :  { %v2668_v9 = vadd.f32 %v3259_v6, %v3006_v4 }
 0x4f6   :  { %v2673_v10 = vmul.f32 0.5, %v2668_v9 }
 0x4f8   :  { %3645 = vtanh.f32 %v2673_v10 }
 0x502   :  { %v3646_v11 = vpop.eup %3645 }
 0x503   :  { %v2675_v12 = vadd.f32 1.0, %v3646_v11 }
 0x505   :  { %v2676_v13 = vmul.f32 0.5, %v2675_v12 }
 0x507   :  { %v2678_v14 = vsel %vm2677_vm2, %v2676_v13, %v2668_v9 }
 0x508   :  { %2680 = vst.msk [vmem:[%s4488_s9] sm:$0x3] %vm2679_vm3, %v2678_v14 }

</bundles_post_ra>
